<compile_context>
chip_gen: v6e
topology: v6e:2x2x1
jax: 0.10.0
libtpu: 0.0.40
codegen_flags: <defaults>
</compile_context>

<pallas_src>
import functools

import jax
import jax.numpy as jnp
from jax import lax
from jax.experimental import pallas as pl
from jax.experimental.pallas import tpu as pltpu


def _structure_loss_kernel(pred_ref, mask_ref, bh_ref, bw_ref, out_ref,
                           bce_acc, wiou_acc, *,
                           nblk_per_core, nc_true, inv_nhw, inv_nc, needs_mask):
    i = pl.program_id(1)                   # block index within this core
    B, H, W = pred_ref.shape               # static block shape

    @pl.when(i == 0)
    def _():
        bce_acc[...] = jnp.zeros_like(bce_acc)
        wiou_acc[...] = jnp.zeros_like(wiou_acc)

    # ---- column-direction pooling, batched over all B slabs ----
    # (B*H, W) @ (W, W) in bf16 with f32 accumulation (exact for 0/1 masks;
    # the banded matrix is 0/1 and partial sums are small integers).
    m_bf = mask_ref[...].astype(jnp.bfloat16).reshape(B * H, W)
    col = jnp.dot(m_bf, bw_ref[...], preferred_element_type=jnp.float32)
    col_bf = col.astype(jnp.bfloat16)      # (B*H, W); integers <= 31, exact

    bh = bh_ref[...]                       # (H, H) bf16, resident across steps

    # Unrolled per-slab loop (B is a small static Python int).
    for b in range(B):
        p_b = pred_ref[b].astype(jnp.float32)          # (H, W) logits
        m_b = mask_ref[b].astype(jnp.float32)          # (H, W) targets

        # row-direction pooling for this slab: (H,H) @ (H,W) on the MXU.
        col_b = col_bf[b * H:(b + 1) * H, :]
        pooled = jnp.dot(bh, col_b,
                         preferred_element_type=jnp.float32) * (1.0 / 961.0)

        weit = 1.0 + 5.0 * jnp.abs(pooled - m_b)

        # BCE-with-logits, elementwise.  softplus(-|p|) = log1p(exp(-|p|))
        # via the classic 1-ulp trick using only log / div / where.
        t = jnp.exp(-jnp.abs(p_b))
        u = 1.0 + t
        softplus = jnp.where(u == 1.0, t, jnp.log(u) * (t / (u - 1.0)))
        bce = jnp.maximum(p_b, 0.0) - p_b * m_b + softplus

        inter = jnp.sum(p_b * m_b * weit, keepdims=True)      # (1, 1)
        union = jnp.sum((p_b + m_b) * weit, keepdims=True)    # (1, 1)
        wiou = 1.0 - (inter + 1.0) / (union - inter + 1.0)

        if needs_mask:
            # Zero out contributions of zero-padded slabs (only traced when
            # N*C does not tile evenly).
            slab_id = (pl.program_id(0) * nblk_per_core + i) * B + b
            scale = (slab_id < nc_true).astype(jnp.float32)
            bce = bce * scale
            wiou = wiou * scale            # zero-padded slabs already give 0

        # Deferred BCE reduction: only VPU adds here; the expensive
        # (H, W) -> scalar reduction happens once in the finalize branch.
        bce_acc[...] += bce
        wiou_acc[...] += wiou

    @pl.when(i == pl.num_programs(1) - 1)
    def _():
        bce_tot = jnp.sum(bce_acc[...], keepdims=True)        # (1, 1)
        # Per-core partial of the final loss (linear combination, so partials
        # from the two cores can simply be summed in the wrapper).
        out_ref[0] = bce_tot * inv_nhw + wiou_acc[...] * inv_nc


def structure_loss(pred, mask, *, max_block=8, n_cores=2):
    """pred, mask: float arrays of shape (N, C, H, W) (NCHW, like PyTorch)."""
    N, C, H, W = pred.shape
    NC = N * C
    # Keep the native dtype; casts happen inside the kernel (halves DMA bytes
    # for bf16 inputs).
    p = pred.reshape(NC, H, W)
    m = mask.reshape(NC, H, W)

    # B slabs per grid step, split across a leading n_cores "parallel" axis.
    B = max(1, min(max_block, pl.cdiv(NC, n_cores)))
    nblk = pl.cdiv(NC, B)
    nblk_per_core = pl.cdiv(nblk, n_cores)
    total = n_cores * nblk_per_core * B
    if total != NC:                         # zero-pad the slab axis if needed
        pad = total - NC
        p = jnp.concatenate([p, jnp.zeros((pad, H, W), p.dtype)], axis=0)
        m = jnp.concatenate([m, jnp.zeros((pad, H, W), m.dtype)], axis=0)

    # Banded ones matrices implementing the 31-wide box filter with zero pad
    # 15.  bf16 operands are exact (entries are 0/1).
    def band(n, half=15):
        idx = jnp.arange(n)
        return (jnp.abs(idx[:, None] - idx[None, :]) <= half).astype(jnp.bfloat16)

    bh = band(H)    # (H, H): pools along rows
    bw = band(W)    # (W, W): pools along cols

    kernel = functools.partial(
        _structure_loss_kernel,
        nblk_per_core=nblk_per_core,
        nc_true=NC,
        inv_nhw=1.0 / float(NC * H * W),
        inv_nc=1.0 / float(NC),
        needs_mask=(total != NC),
    )

    partials = pl.pallas_call(
        kernel,
        out_shape=jax.ShapeDtypeStruct((n_cores, 1, 1), jnp.float32),
        grid_spec=pltpu.PrefetchScalarGridSpec(
            num_scalar_prefetch=0,
            grid=(n_cores, nblk_per_core),
            in_specs=[
                pl.BlockSpec((B, H, W),
                             lambda c, i: (c * nblk_per_core + i, 0, 0)),
                pl.BlockSpec((B, H, W),
                             lambda c, i: (c * nblk_per_core + i, 0, 0)),
                # Constant index maps -> no re-DMA across steps.
                # TODO(synk): could single-buffer these (pl.Buffered(1)) to
                # shave ~1 MiB of VMEM at PraNet sizes.
                pl.BlockSpec((H, H), lambda c, i: (0, 0)),
                pl.BlockSpec((W, W), lambda c, i: (0, 0)),
            ],
            # Per-core partial loss; summed in the wrapper.
            out_specs=pl.BlockSpec((1, 1, 1), lambda c, i: (c, 0, 0)),
            scratch_shapes=[
                pltpu.VMEM((H, W), jnp.float32),   # deferred BCE partials
                pltpu.VMEM((1, 1), jnp.float32),   # running wIoU sum
            ],
        ),
        compiler_params=pltpu.CompilerParams(
            dimension_semantics=("parallel", "arbitrary"),
            vmem_limit_bytes=32 * 1024 * 1024,
        ),
    )(p, m, bh, bw)
    return jnp.sum(partials)


def structure_loss_ref(pred, mask):
    """Pure-JAX reference mirroring the PyTorch forward exactly."""
    k, pad = 31, 15
    pooled = lax.reduce_window(
        mask, 0.0, lax.add, (1, 1, k, k), (1, 1, 1, 1),
        [(0, 0), (0, 0), (pad, pad), (pad, pad)]) / (k * k)
    weit = 1 + 5 * jnp.abs(pooled - mask)
    bce = jnp.maximum(pred, 0) - pred * mask + jnp.log1p(jnp.exp(-jnp.abs(pred)))
    wbce_scalar = bce.mean()   # reduce='none' resolves to reduction='mean'
    wbce = (weit * wbce_scalar).sum(axis=(2, 3)) / weit.sum(axis=(2, 3))
    inter = (pred * mask * weit).sum(axis=(2, 3))
    union = ((pred + mask) * weit).sum(axis=(2, 3))
    wiou = 1 - (inter + 1) / (union - inter + 1)
    return (wbce + wiou).mean()


if __name__ == "__main__":
    key = jax.random.PRNGKey(0)
    k1, k2 = jax.random.split(key)
    shape = (2, 4, 16, 16)
    pred = jax.random.normal(k1, shape, dtype=jnp.float32)            # logits
    mask = (jax.random.uniform(k2, shape) > 0.5).astype(jnp.float32)  # {0,1} targets

    loss = jax.block_until_ready(structure_loss(pred, mask))
    ref = jax.block_until_ready(structure_loss_ref(pred, mask))
    assert jnp.allclose(loss, ref, rtol=1e-5, atol=1e-5), (loss, ref)

    print("KERNEL_OK")
</pallas_src>

<mosaic_0001>
module attributes {stable_mosaic.version = 11 : i64} {
  func.func @_structure_loss_kernel(%arg0: i32, %arg1: i32, %arg2: memref<4x16x16xf32, #tpu.memory_space<vmem>>, %arg3: memref<4x16x16xf32, #tpu.memory_space<vmem>>, %arg4: memref<16x16xbf16, #tpu.memory_space<vmem>>, %arg5: memref<16x16xbf16, #tpu.memory_space<vmem>>, %arg6: memref<1x1x1xf32, #tpu.memory_space<vmem>>, %arg7: memref<16x16xf32, #tpu.memory_space<vmem>>, %arg8: memref<1x1xf32, #tpu.memory_space<vmem>>) attributes {dimension_semantics = [#tpu.dimension_semantics<parallel>, #tpu.dimension_semantics<arbitrary>], iteration_bounds = array<i64: 2, 1>, scalar_prefetch = 0 : i64, scratch_operands = 2 : i64, tpu.core_type = #tpu.core_type<tc>, window_params = [{transform_indices = @transform_0, window_bounds = array<i64: 4, 16, 16>}, {transform_indices = @transform_1, window_bounds = array<i64: 4, 16, 16>}, {pipeline_mode = #tpu.pipeline_mode<synchronous>, transform_indices = @transform_2, window_bounds = array<i64: 16, 16>}, {pipeline_mode = #tpu.pipeline_mode<synchronous>, transform_indices = @transform_3, window_bounds = array<i64: 16, 16>}, {transform_indices = @transform_4, window_bounds = array<i64: 1, 1, 1>}]} {
    %c0_i32 = arith.constant 0 : i32
    %0 = arith.cmpi eq, %arg1, %c0_i32 : i32
    %1 = arith.extui %0 : i1 to i32
    %c0_i32_0 = arith.constant 0 : i32
    %2 = arith.cmpi ne, %1, %c0_i32_0 : i32
    scf.if %2 {
      %cst_118 = arith.constant 0.000000e+00 : f32
      %257 = vector.broadcast %cst_118 : f32 to vector<16x16xf32>
      %c0_119 = arith.constant 0 : index
      %c0_120 = arith.constant 0 : index
      %258 = vector.load %arg7[%c0_119, %c0_120] : memref<16x16xf32, #tpu.memory_space<vmem>>, vector<16x16xf32>
      tpu.vector_store %arg7[%c0_119, %c0_120], %257 {strides = array<i32>} : memref<16x16xf32, #tpu.memory_space<vmem>>, vector<16x16xf32>,
      %cst_121 = arith.constant 0.000000e+00 : f32
      %259 = vector.broadcast %cst_121 : f32 to vector<1x1xf32>
      %c0_122 = arith.constant 0 : index
      %c0_123 = arith.constant 0 : index
      %260 = vector.load %arg8[%c0_122, %c0_123] : memref<1x1xf32, #tpu.memory_space<vmem>>, vector<1x1xf32>
      tpu.vector_store %arg8[%c0_122, %c0_123], %259 {strides = array<i32>} : memref<1x1xf32, #tpu.memory_space<vmem>>, vector<1x1xf32>,
    } else {
    }
    %c0 = arith.constant 0 : index
    %c0_1 = arith.constant 0 : index
    %c0_2 = arith.constant 0 : index
    %3 = vector.load %arg3[%c0, %c0_1, %c0_2] : memref<4x16x16xf32, #tpu.memory_space<vmem>>, vector<4x16x16xf32>
    %4 = arith.truncf %3 : vector<4x16x16xf32> to vector<4x16x16xbf16>
    %5 = vector.shape_cast %4 : vector<4x16x16xbf16> to vector<64x16xbf16>
    %c0_3 = arith.constant 0 : index
    %c0_4 = arith.constant 0 : index
    %6 = vector.load %arg5[%c0_3, %c0_4] : memref<16x16xbf16, #tpu.memory_space<vmem>>, vector<16x16xbf16>
    %cst = arith.constant dense<0.000000e+00> : vector<64x16xf32>
    %7 = tpu.matmul %5, %6, %cst {dimension_numbers = #tpu.dot_dimension_numbers<[1], [0], [0], [1], [0, 0, 1, 1], [], []>} : vector<64x16xbf16>, vector<16x16xbf16>, vector<64x16xf32> -> vector<64x16xf32>
    %8 = arith.truncf %7 : vector<64x16xf32> to vector<64x16xbf16>
    %c0_5 = arith.constant 0 : index
    %c0_6 = arith.constant 0 : index
    %9 = vector.load %arg4[%c0_5, %c0_6] : memref<16x16xbf16, #tpu.memory_space<vmem>>, vector<16x16xbf16>
    %c0_7 = arith.constant 0 : index
    %c0_8 = arith.constant 0 : index
    %c0_9 = arith.constant 0 : index
    %10 = vector.load %arg2[%c0_7, %c0_8, %c0_9] : memref<4x16x16xf32, #tpu.memory_space<vmem>>, vector<1x16x16xf32>
    %11 = vector.shape_cast %10 : vector<1x16x16xf32> to vector<16x16xf32>
    %c0_10 = arith.constant 0 : index
    %c0_11 = arith.constant 0 : index
    %c0_12 = arith.constant 0 : index
    %12 = vector.load %arg3[%c0_10, %c0_11, %c0_12] : memref<4x16x16xf32, #tpu.memory_space<vmem>>, vector<1x16x16xf32>
    %13 = vector.shape_cast %12 : vector<1x16x16xf32> to vector<16x16xf32>
    %14 = vector.extract_strided_slice %8 {offsets = [0, 0], sizes = [16, 16], strides = [1, 1]} : vector<64x16xbf16> to vector<16x16xbf16>
    %cst_13 = arith.constant dense<0.000000e+00> : vector<16x16xf32>
    %15 = tpu.matmul %9, %14, %cst_13 {dimension_numbers = #tpu.dot_dimension_numbers<[1], [0], [0], [1], [0, 0, 1, 1], [], []>} : vector<16x16xbf16>, vector<16x16xbf16>, vector<16x16xf32> -> vector<16x16xf32>
    %cst_14 = arith.constant 0.00104058278 : f32
    %16 = vector.broadcast %cst_14 : f32 to vector<16x16xf32>
    %17 = arith.mulf %15, %16 : vector<16x16xf32>
    %18 = arith.subf %17, %13 : vector<16x16xf32>
    %19 = math.absf %18 : vector<16x16xf32>
    %cst_15 = arith.constant 5.000000e+00 : f32
    %20 = vector.broadcast %cst_15 : f32 to vector<16x16xf32>
    %21 = arith.mulf %20, %19 : vector<16x16xf32>
    %cst_16 = arith.constant 1.000000e+00 : f32
    %22 = vector.broadcast %cst_16 : f32 to vector<16x16xf32>
    %23 = arith.addf %22, %21 : vector<16x16xf32>
    %24 = math.absf %11 : vector<16x16xf32>
    %cst_17 = arith.constant 0.000000e+00 : f32
    %25 = vector.broadcast %cst_17 : f32 to vector<16x16xf32>
    %26 = arith.subf %25, %24 : vector<16x16xf32>
    %27 = math.exp %26 : vector<16x16xf32>
    %cst_18 = arith.constant 1.000000e+00 : f32
    %28 = vector.broadcast %cst_18 : f32 to vector<16x16xf32>
    %29 = arith.addf %28, %27 : vector<16x16xf32>
    %cst_19 = arith.constant 1.000000e+00 : f32
    %30 = vector.broadcast %cst_19 : f32 to vector<16x16xf32>
    %31 = arith.cmpf oeq, %29, %30 : vector<16x16xf32>
    %32 = math.log %29 : vector<16x16xf32>
    %cst_20 = arith.constant 1.000000e+00 : f32
    %33 = vector.broadcast %cst_20 : f32 to vector<16x16xf32>
    %34 = arith.subf %29, %33 : vector<16x16xf32>
    %35 = arith.divf %27, %34 : vector<16x16xf32>
    %36 = arith.mulf %32, %35 : vector<16x16xf32>
    %37 = arith.select %31, %27, %36 : vector<16x16xi1>, vector<16x16xf32>
    %cst_21 = arith.constant 0.000000e+00 : f32
    %38 = vector.broadcast %cst_21 : f32 to vector<16x16xf32>
    %39 = arith.maximumf %11, %38 : vector<16x16xf32>
    %40 = arith.mulf %11, %13 : vector<16x16xf32>
    %41 = arith.subf %39, %40 : vector<16x16xf32>
    %42 = arith.addf %41, %37 : vector<16x16xf32>
    %43 = arith.mulf %11, %13 : vector<16x16xf32>
    %44 = arith.mulf %43, %23 : vector<16x16xf32>
    %45 = vector.shape_cast %44 : vector<16x16xf32> to vector<1x16x16xf32>
    %cst_22 = arith.constant dense<0.000000e+00> : vector<1xf32>
    %46 = vector.multi_reduction <add>, %45, %cst_22 [1, 2] : vector<1x16x16xf32> to vector<1xf32>
    %47 = vector.shape_cast %46 : vector<1xf32> to vector<1x1x1xf32>
    %48 = vector.extract %47[0, 0, 0] : f32 from vector<1x1x1xf32>
    %49 = vector.broadcast %48 : f32 to vector<1x1xf32>
    %50 = arith.addf %11, %13 : vector<16x16xf32>
    %51 = arith.mulf %50, %23 : vector<16x16xf32>
    %52 = vector.shape_cast %51 : vector<16x16xf32> to vector<1x16x16xf32>
    %cst_23 = arith.constant dense<0.000000e+00> : vector<1xf32>
    %53 = vector.multi_reduction <add>, %52, %cst_23 [1, 2] : vector<1x16x16xf32> to vector<1xf32>
    %54 = vector.shape_cast %53 : vector<1xf32> to vector<1x1x1xf32>
    %55 = vector.extract %54[0, 0, 0] : f32 from vector<1x1x1xf32>
    %56 = vector.broadcast %55 : f32 to vector<1x1xf32>
    %cst_24 = arith.constant 1.000000e+00 : f32
    %57 = vector.broadcast %cst_24 : f32 to vector<1x1xf32>
    %58 = arith.addf %49, %57 : vector<1x1xf32>
    %59 = arith.subf %56, %49 : vector<1x1xf32>
    %cst_25 = arith.constant 1.000000e+00 : f32
    %60 = vector.broadcast %cst_25 : f32 to vector<1x1xf32>
    %61 = arith.addf %59, %60 : vector<1x1xf32>
    %62 = arith.divf %58, %61 : vector<1x1xf32>
    %cst_26 = arith.constant 1.000000e+00 : f32
    %63 = vector.broadcast %cst_26 : f32 to vector<1x1xf32>
    %64 = arith.subf %63, %62 : vector<1x1xf32>
    %c0_27 = arith.constant 0 : index
    %c0_28 = arith.constant 0 : index
    %65 = vector.load %arg7[%c0_27, %c0_28] : memref<16x16xf32, #tpu.memory_space<vmem>>, vector<16x16xf32>
    %66 = arith.addf %65, %42 : vector<16x16xf32>
    %c0_29 = arith.constant 0 : index
    %c0_30 = arith.constant 0 : index
    %67 = vector.load %arg7[%c0_29, %c0_30] : memref<16x16xf32, #tpu.memory_space<vmem>>, vector<16x16xf32>
    tpu.vector_store %arg7[%c0_29, %c0_30], %66 {strides = array<i32>} : memref<16x16xf32, #tpu.memory_space<vmem>>, vector<16x16xf32>,
    %c0_31 = arith.constant 0 : index
    %c0_32 = arith.constant 0 : index
    %68 = vector.load %arg8[%c0_31, %c0_32] : memref<1x1xf32, #tpu.memory_space<vmem>>, vector<1x1xf32>
    %69 = arith.addf %68, %64 : vector<1x1xf32>
    %c0_33 = arith.constant 0 : index
    %c0_34 = arith.constant 0 : index
    %70 = vector.load %arg8[%c0_33, %c0_34] : memref<1x1xf32, #tpu.memory_space<vmem>>, vector<1x1xf32>
    tpu.vector_store %arg8[%c0_33, %c0_34], %69 {strides = array<i32>} : memref<1x1xf32, #tpu.memory_space<vmem>>, vector<1x1xf32>,
    %c1 = arith.constant 1 : index
    %c0_35 = arith.constant 0 : index
    %c0_36 = arith.constant 0 : index
    %71 = vector.load %arg2[%c1, %c0_35, %c0_36] : memref<4x16x16xf32, #tpu.memory_space<vmem>>, vector<1x16x16xf32>
    %72 = vector.shape_cast %71 : vector<1x16x16xf32> to vector<16x16xf32>
    %c1_37 = arith.constant 1 : index
    %c0_38 = arith.constant 0 : index
    %c0_39 = arith.constant 0 : index
    %73 = vector.load %arg3[%c1_37, %c0_38, %c0_39] : memref<4x16x16xf32, #tpu.memory_space<vmem>>, vector<1x16x16xf32>
    %74 = vector.shape_cast %73 : vector<1x16x16xf32> to vector<16x16xf32>
    %75 = vector.extract_strided_slice %8 {offsets = [16, 0], sizes = [16, 16], strides = [1, 1]} : vector<64x16xbf16> to vector<16x16xbf16>
    %cst_40 = arith.constant dense<0.000000e+00> : vector<16x16xf32>
    %76 = tpu.matmul %9, %75, %cst_40 {dimension_numbers = #tpu.dot_dimension_numbers<[1], [0], [0], [1], [0, 0, 1, 1], [], []>} : vector<16x16xbf16>, vector<16x16xbf16>, vector<16x16xf32> -> vector<16x16xf32>
    %cst_41 = arith.constant 0.00104058278 : f32
    %77 = vector.broadcast %cst_41 : f32 to vector<16x16xf32>
    %78 = arith.mulf %76, %77 : vector<16x16xf32>
    %79 = arith.subf %78, %74 : vector<16x16xf32>
    %80 = math.absf %79 : vector<16x16xf32>
    %cst_42 = arith.constant 5.000000e+00 : f32
    %81 = vector.broadcast %cst_42 : f32 to vector<16x16xf32>
    %82 = arith.mulf %81, %80 : vector<16x16xf32>
    %cst_43 = arith.constant 1.000000e+00 : f32
    %83 = vector.broadcast %cst_43 : f32 to vector<16x16xf32>
    %84 = arith.addf %83, %82 : vector<16x16xf32>
    %85 = math.absf %72 : vector<16x16xf32>
    %cst_44 = arith.constant 0.000000e+00 : f32
    %86 = vector.broadcast %cst_44 : f32 to vector<16x16xf32>
    %87 = arith.subf %86, %85 : vector<16x16xf32>
    %88 = math.exp %87 : vector<16x16xf32>
    %cst_45 = arith.constant 1.000000e+00 : f32
    %89 = vector.broadcast %cst_45 : f32 to vector<16x16xf32>
    %90 = arith.addf %89, %88 : vector<16x16xf32>
    %cst_46 = arith.constant 1.000000e+00 : f32
    %91 = vector.broadcast %cst_46 : f32 to vector<16x16xf32>
    %92 = arith.cmpf oeq, %90, %91 : vector<16x16xf32>
    %93 = math.log %90 : vector<16x16xf32>
    %cst_47 = arith.constant 1.000000e+00 : f32
    %94 = vector.broadcast %cst_47 : f32 to vector<16x16xf32>
    %95 = arith.subf %90, %94 : vector<16x16xf32>
    %96 = arith.divf %88, %95 : vector<16x16xf32>
    %97 = arith.mulf %93, %96 : vector<16x16xf32>
    %98 = arith.select %92, %88, %97 : vector<16x16xi1>, vector<16x16xf32>
    %cst_48 = arith.constant 0.000000e+00 : f32
    %99 = vector.broadcast %cst_48 : f32 to vector<16x16xf32>
    %100 = arith.maximumf %72, %99 : vector<16x16xf32>
    %101 = arith.mulf %72, %74 : vector<16x16xf32>
    %102 = arith.subf %100, %101 : vector<16x16xf32>
    %103 = arith.addf %102, %98 : vector<16x16xf32>
    %104 = arith.mulf %72, %74 : vector<16x16xf32>
    %105 = arith.mulf %104, %84 : vector<16x16xf32>
    %106 = vector.shape_cast %105 : vector<16x16xf32> to vector<1x16x16xf32>
    %cst_49 = arith.constant dense<0.000000e+00> : vector<1xf32>
    %107 = vector.multi_reduction <add>, %106, %cst_49 [1, 2] : vector<1x16x16xf32> to vector<1xf32>
    %108 = vector.shape_cast %107 : vector<1xf32> to vector<1x1x1xf32>
    %109 = vector.extract %108[0, 0, 0] : f32 from vector<1x1x1xf32>
    %110 = vector.broadcast %109 : f32 to vector<1x1xf32>
    %111 = arith.addf %72, %74 : vector<16x16xf32>
    %112 = arith.mulf %111, %84 : vector<16x16xf32>
    %113 = vector.shape_cast %112 : vector<16x16xf32> to vector<1x16x16xf32>
    %cst_50 = arith.constant dense<0.000000e+00> : vector<1xf32>
    %114 = vector.multi_reduction <add>, %113, %cst_50 [1, 2] : vector<1x16x16xf32> to vector<1xf32>
    %115 = vector.shape_cast %114 : vector<1xf32> to vector<1x1x1xf32>
    %116 = vector.extract %115[0, 0, 0] : f32 from vector<1x1x1xf32>
    %117 = vector.broadcast %116 : f32 to vector<1x1xf32>
    %cst_51 = arith.constant 1.000000e+00 : f32
    %118 = vector.broadcast %cst_51 : f32 to vector<1x1xf32>
    %119 = arith.addf %110, %118 : vector<1x1xf32>
    %120 = arith.subf %117, %110 : vector<1x1xf32>
    %cst_52 = arith.constant 1.000000e+00 : f32
    %121 = vector.broadcast %cst_52 : f32 to vector<1x1xf32>
    %122 = arith.addf %120, %121 : vector<1x1xf32>
    %123 = arith.divf %119, %122 : vector<1x1xf32>
    %cst_53 = arith.constant 1.000000e+00 : f32
    %124 = vector.broadcast %cst_53 : f32 to vector<1x1xf32>
    %125 = arith.subf %124, %123 : vector<1x1xf32>
    %c0_54 = arith.constant 0 : index
    %c0_55 = arith.constant 0 : index
    %126 = vector.load %arg7[%c0_54, %c0_55] : memref<16x16xf32, #tpu.memory_space<vmem>>, vector<16x16xf32>
    %127 = arith.addf %126, %103 : vector<16x16xf32>
    %c0_56 = arith.constant 0 : index
    %c0_57 = arith.constant 0 : index
    %128 = vector.load %arg7[%c0_56, %c0_57] : memref<16x16xf32, #tpu.memory_space<vmem>>, vector<16x16xf32>
    tpu.vector_store %arg7[%c0_56, %c0_57], %127 {strides = array<i32>} : memref<16x16xf32, #tpu.memory_space<vmem>>, vector<16x16xf32>,
    %c0_58 = arith.constant 0 : index
    %c0_59 = arith.constant 0 : index
    %129 = vector.load %arg8[%c0_58, %c0_59] : memref<1x1xf32, #tpu.memory_space<vmem>>, vector<1x1xf32>
    %130 = arith.addf %129, %125 : vector<1x1xf32>
    %c0_60 = arith.constant 0 : index
    %c0_61 = arith.constant 0 : index
    %131 = vector.load %arg8[%c0_60, %c0_61] : memref<1x1xf32, #tpu.memory_space<vmem>>, vector<1x1xf32>
    tpu.vector_store %arg8[%c0_60, %c0_61], %130 {strides = array<i32>} : memref<1x1xf32, #tpu.memory_space<vmem>>, vector<1x1xf32>,
    %c2 = arith.constant 2 : index
    %c0_62 = arith.constant 0 : index
    %c0_63 = arith.constant 0 : index
    %132 = vector.load %arg2[%c2, %c0_62, %c0_63] : memref<4x16x16xf32, #tpu.memory_space<vmem>>, vector<1x16x16xf32>
    %133 = vector.shape_cast %132 : vector<1x16x16xf32> to vector<16x16xf32>
    %c2_64 = arith.constant 2 : index
    %c0_65 = arith.constant 0 : index
    %c0_66 = arith.constant 0 : index
    %134 = vector.load %arg3[%c2_64, %c0_65, %c0_66] : memref<4x16x16xf32, #tpu.memory_space<vmem>>, vector<1x16x16xf32>
    %135 = vector.shape_cast %134 : vector<1x16x16xf32> to vector<16x16xf32>
    %136 = vector.extract_strided_slice %8 {offsets = [32, 0], sizes = [16, 16], strides = [1, 1]} : vector<64x16xbf16> to vector<16x16xbf16>
    %cst_67 = arith.constant dense<0.000000e+00> : vector<16x16xf32>
    %137 = tpu.matmul %9, %136, %cst_67 {dimension_numbers = #tpu.dot_dimension_numbers<[1], [0], [0], [1], [0, 0, 1, 1], [], []>} : vector<16x16xbf16>, vector<16x16xbf16>, vector<16x16xf32> -> vector<16x16xf32>
    %cst_68 = arith.constant 0.00104058278 : f32
    %138 = vector.broadcast %cst_68 : f32 to vector<16x16xf32>
    %139 = arith.mulf %137, %138 : vector<16x16xf32>
    %140 = arith.subf %139, %135 : vector<16x16xf32>
    %141 = math.absf %140 : vector<16x16xf32>
    %cst_69 = arith.constant 5.000000e+00 : f32
    %142 = vector.broadcast %cst_69 : f32 to vector<16x16xf32>
    %143 = arith.mulf %142, %141 : vector<16x16xf32>
    %cst_70 = arith.constant 1.000000e+00 : f32
    %144 = vector.broadcast %cst_70 : f32 to vector<16x16xf32>
    %145 = arith.addf %144, %143 : vector<16x16xf32>
    %146 = math.absf %133 : vector<16x16xf32>
    %cst_71 = arith.constant 0.000000e+00 : f32
    %147 = vector.broadcast %cst_71 : f32 to vector<16x16xf32>
    %148 = arith.subf %147, %146 : vector<16x16xf32>
    %149 = math.exp %148 : vector<16x16xf32>
    %cst_72 = arith.constant 1.000000e+00 : f32
    %150 = vector.broadcast %cst_72 : f32 to vector<16x16xf32>
    %151 = arith.addf %150, %149 : vector<16x16xf32>
    %cst_73 = arith.constant 1.000000e+00 : f32
    %152 = vector.broadcast %cst_73 : f32 to vector<16x16xf32>
    %153 = arith.cmpf oeq, %151, %152 : vector<16x16xf32>
    %154 = math.log %151 : vector<16x16xf32>
    %cst_74 = arith.constant 1.000000e+00 : f32
    %155 = vector.broadcast %cst_74 : f32 to vector<16x16xf32>
    %156 = arith.subf %151, %155 : vector<16x16xf32>
    %157 = arith.divf %149, %156 : vector<16x16xf32>
    %158 = arith.mulf %154, %157 : vector<16x16xf32>
    %159 = arith.select %153, %149, %158 : vector<16x16xi1>, vector<16x16xf32>
    %cst_75 = arith.constant 0.000000e+00 : f32
    %160 = vector.broadcast %cst_75 : f32 to vector<16x16xf32>
    %161 = arith.maximumf %133, %160 : vector<16x16xf32>
    %162 = arith.mulf %133, %135 : vector<16x16xf32>
    %163 = arith.subf %161, %162 : vector<16x16xf32>
    %164 = arith.addf %163, %159 : vector<16x16xf32>
    %165 = arith.mulf %133, %135 : vector<16x16xf32>
    %166 = arith.mulf %165, %145 : vector<16x16xf32>
    %167 = vector.shape_cast %166 : vector<16x16xf32> to vector<1x16x16xf32>
    %cst_76 = arith.constant dense<0.000000e+00> : vector<1xf32>
    %168 = vector.multi_reduction <add>, %167, %cst_76 [1, 2] : vector<1x16x16xf32> to vector<1xf32>
    %169 = vector.shape_cast %168 : vector<1xf32> to vector<1x1x1xf32>
    %170 = vector.extract %169[0, 0, 0] : f32 from vector<1x1x1xf32>
    %171 = vector.broadcast %170 : f32 to vector<1x1xf32>
    %172 = arith.addf %133, %135 : vector<16x16xf32>
    %173 = arith.mulf %172, %145 : vector<16x16xf32>
    %174 = vector.shape_cast %173 : vector<16x16xf32> to vector<1x16x16xf32>
    %cst_77 = arith.constant dense<0.000000e+00> : vector<1xf32>
    %175 = vector.multi_reduction <add>, %174, %cst_77 [1, 2] : vector<1x16x16xf32> to vector<1xf32>
    %176 = vector.shape_cast %175 : vector<1xf32> to vector<1x1x1xf32>
    %177 = vector.extract %176[0, 0, 0] : f32 from vector<1x1x1xf32>
    %178 = vector.broadcast %177 : f32 to vector<1x1xf32>
    %cst_78 = arith.constant 1.000000e+00 : f32
    %179 = vector.broadcast %cst_78 : f32 to vector<1x1xf32>
    %180 = arith.addf %171, %179 : vector<1x1xf32>
    %181 = arith.subf %178, %171 : vector<1x1xf32>
    %cst_79 = arith.constant 1.000000e+00 : f32
    %182 = vector.broadcast %cst_79 : f32 to vector<1x1xf32>
    %183 = arith.addf %181, %182 : vector<1x1xf32>
    %184 = arith.divf %180, %183 : vector<1x1xf32>
    %cst_80 = arith.constant 1.000000e+00 : f32
    %185 = vector.broadcast %cst_80 : f32 to vector<1x1xf32>
    %186 = arith.subf %185, %184 : vector<1x1xf32>
    %c0_81 = arith.constant 0 : index
    %c0_82 = arith.constant 0 : index
    %187 = vector.load %arg7[%c0_81, %c0_82] : memref<16x16xf32, #tpu.memory_space<vmem>>, vector<16x16xf32>
    %188 = arith.addf %187, %164 : vector<16x16xf32>
    %c0_83 = arith.constant 0 : index
    %c0_84 = arith.constant 0 : index
    %189 = vector.load %arg7[%c0_83, %c0_84] : memref<16x16xf32, #tpu.memory_space<vmem>>, vector<16x16xf32>
    tpu.vector_store %arg7[%c0_83, %c0_84], %188 {strides = array<i32>} : memref<16x16xf32, #tpu.memory_space<vmem>>, vector<16x16xf32>,
    %c0_85 = arith.constant 0 : index
    %c0_86 = arith.constant 0 : index
    %190 = vector.load %arg8[%c0_85, %c0_86] : memref<1x1xf32, #tpu.memory_space<vmem>>, vector<1x1xf32>
    %191 = arith.addf %190, %186 : vector<1x1xf32>
    %c0_87 = arith.constant 0 : index
    %c0_88 = arith.constant 0 : index
    %192 = vector.load %arg8[%c0_87, %c0_88] : memref<1x1xf32, #tpu.memory_space<vmem>>, vector<1x1xf32>
    tpu.vector_store %arg8[%c0_87, %c0_88], %191 {strides = array<i32>} : memref<1x1xf32, #tpu.memory_space<vmem>>, vector<1x1xf32>,
    %c3 = arith.constant 3 : index
    %c0_89 = arith.constant 0 : index
    %c0_90 = arith.constant 0 : index
    %193 = vector.load %arg2[%c3, %c0_89, %c0_90] : memref<4x16x16xf32, #tpu.memory_space<vmem>>, vector<1x16x16xf32>
    %194 = vector.shape_cast %193 : vector<1x16x16xf32> to vector<16x16xf32>
    %c3_91 = arith.constant 3 : index
    %c0_92 = arith.constant 0 : index
    %c0_93 = arith.constant 0 : index
    %195 = vector.load %arg3[%c3_91, %c0_92, %c0_93] : memref<4x16x16xf32, #tpu.memory_space<vmem>>, vector<1x16x16xf32>
    %196 = vector.shape_cast %195 : vector<1x16x16xf32> to vector<16x16xf32>
    %197 = vector.extract_strided_slice %8 {offsets = [48, 0], sizes = [16, 16], strides = [1, 1]} : vector<64x16xbf16> to vector<16x16xbf16>
    %cst_94 = arith.constant dense<0.000000e+00> : vector<16x16xf32>
    %198 = tpu.matmul %9, %197, %cst_94 {dimension_numbers = #tpu.dot_dimension_numbers<[1], [0], [0], [1], [0, 0, 1, 1], [], []>} : vector<16x16xbf16>, vector<16x16xbf16>, vector<16x16xf32> -> vector<16x16xf32>
    %cst_95 = arith.constant 0.00104058278 : f32
    %199 = vector.broadcast %cst_95 : f32 to vector<16x16xf32>
    %200 = arith.mulf %198, %199 : vector<16x16xf32>
    %201 = arith.subf %200, %196 : vector<16x16xf32>
    %202 = math.absf %201 : vector<16x16xf32>
    %cst_96 = arith.constant 5.000000e+00 : f32
    %203 = vector.broadcast %cst_96 : f32 to vector<16x16xf32>
    %204 = arith.mulf %203, %202 : vector<16x16xf32>
    %cst_97 = arith.constant 1.000000e+00 : f32
    %205 = vector.broadcast %cst_97 : f32 to vector<16x16xf32>
    %206 = arith.addf %205, %204 : vector<16x16xf32>
    %207 = math.absf %194 : vector<16x16xf32>
    %cst_98 = arith.constant 0.000000e+00 : f32
    %208 = vector.broadcast %cst_98 : f32 to vector<16x16xf32>
    %209 = arith.subf %208, %207 : vector<16x16xf32>
    %210 = math.exp %209 : vector<16x16xf32>
    %cst_99 = arith.constant 1.000000e+00 : f32
    %211 = vector.broadcast %cst_99 : f32 to vector<16x16xf32>
    %212 = arith.addf %211, %210 : vector<16x16xf32>
    %cst_100 = arith.constant 1.000000e+00 : f32
    %213 = vector.broadcast %cst_100 : f32 to vector<16x16xf32>
    %214 = arith.cmpf oeq, %212, %213 : vector<16x16xf32>
    %215 = math.log %212 : vector<16x16xf32>
    %cst_101 = arith.constant 1.000000e+00 : f32
    %216 = vector.broadcast %cst_101 : f32 to vector<16x16xf32>
    %217 = arith.subf %212, %216 : vector<16x16xf32>
    %218 = arith.divf %210, %217 : vector<16x16xf32>
    %219 = arith.mulf %215, %218 : vector<16x16xf32>
    %220 = arith.select %214, %210, %219 : vector<16x16xi1>, vector<16x16xf32>
    %cst_102 = arith.constant 0.000000e+00 : f32
    %221 = vector.broadcast %cst_102 : f32 to vector<16x16xf32>
    %222 = arith.maximumf %194, %221 : vector<16x16xf32>
    %223 = arith.mulf %194, %196 : vector<16x16xf32>
    %224 = arith.subf %222, %223 : vector<16x16xf32>
    %225 = arith.addf %224, %220 : vector<16x16xf32>
    %226 = arith.mulf %194, %196 : vector<16x16xf32>
    %227 = arith.mulf %226, %206 : vector<16x16xf32>
    %228 = vector.shape_cast %227 : vector<16x16xf32> to vector<1x16x16xf32>
    %cst_103 = arith.constant dense<0.000000e+00> : vector<1xf32>
    %229 = vector.multi_reduction <add>, %228, %cst_103 [1, 2] : vector<1x16x16xf32> to vector<1xf32>
    %230 = vector.shape_cast %229 : vector<1xf32> to vector<1x1x1xf32>
    %231 = vector.extract %230[0, 0, 0] : f32 from vector<1x1x1xf32>
    %232 = vector.broadcast %231 : f32 to vector<1x1xf32>
    %233 = arith.addf %194, %196 : vector<16x16xf32>
    %234 = arith.mulf %233, %206 : vector<16x16xf32>
    %235 = vector.shape_cast %234 : vector<16x16xf32> to vector<1x16x16xf32>
    %cst_104 = arith.constant dense<0.000000e+00> : vector<1xf32>
    %236 = vector.multi_reduction <add>, %235, %cst_104 [1, 2] : vector<1x16x16xf32> to vector<1xf32>
    %237 = vector.shape_cast %236 : vector<1xf32> to vector<1x1x1xf32>
    %238 = vector.extract %237[0, 0, 0] : f32 from vector<1x1x1xf32>
    %239 = vector.broadcast %238 : f32 to vector<1x1xf32>
    %cst_105 = arith.constant 1.000000e+00 : f32
    %240 = vector.broadcast %cst_105 : f32 to vector<1x1xf32>
    %241 = arith.addf %232, %240 : vector<1x1xf32>
    %242 = arith.subf %239, %232 : vector<1x1xf32>
    %cst_106 = arith.constant 1.000000e+00 : f32
    %243 = vector.broadcast %cst_106 : f32 to vector<1x1xf32>
    %244 = arith.addf %242, %243 : vector<1x1xf32>
    %245 = arith.divf %241, %244 : vector<1x1xf32>
    %cst_107 = arith.constant 1.000000e+00 : f32
    %246 = vector.broadcast %cst_107 : f32 to vector<1x1xf32>
    %247 = arith.subf %246, %245 : vector<1x1xf32>
    %c0_108 = arith.constant 0 : index
    %c0_109 = arith.constant 0 : index
    %248 = vector.load %arg7[%c0_108, %c0_109] : memref<16x16xf32, #tpu.memory_space<vmem>>, vector<16x16xf32>
    %249 = arith.addf %248, %225 : vector<16x16xf32>
    %c0_110 = arith.constant 0 : index
    %c0_111 = arith.constant 0 : index
    %250 = vector.load %arg7[%c0_110, %c0_111] : memref<16x16xf32, #tpu.memory_space<vmem>>, vector<16x16xf32>
    tpu.vector_store %arg7[%c0_110, %c0_111], %249 {strides = array<i32>} : memref<16x16xf32, #tpu.memory_space<vmem>>, vector<16x16xf32>,
    %c0_112 = arith.constant 0 : index
    %c0_113 = arith.constant 0 : index
    %251 = vector.load %arg8[%c0_112, %c0_113] : memref<1x1xf32, #tpu.memory_space<vmem>>, vector<1x1xf32>
    %252 = arith.addf %251, %247 : vector<1x1xf32>
    %c0_114 = arith.constant 0 : index
    %c0_115 = arith.constant 0 : index
    %253 = vector.load %arg8[%c0_114, %c0_115] : memref<1x1xf32, #tpu.memory_space<vmem>>, vector<1x1xf32>
    tpu.vector_store %arg8[%c0_114, %c0_115], %252 {strides = array<i32>} : memref<1x1xf32, #tpu.memory_space<vmem>>, vector<1x1xf32>,
    %c0_i32_116 = arith.constant 0 : i32
    %254 = arith.cmpi eq, %arg1, %c0_i32_116 : i32
    %255 = arith.extui %254 : i1 to i32
    %c0_i32_117 = arith.constant 0 : i32
    %256 = arith.cmpi ne, %255, %c0_i32_117 : i32
    scf.if %256 {
      %c0_118 = arith.constant 0 : index
      %c0_119 = arith.constant 0 : index
      %257 = vector.load %arg7[%c0_118, %c0_119] : memref<16x16xf32, #tpu.memory_space<vmem>>, vector<16x16xf32>
      %258 = vector.shape_cast %257 : vector<16x16xf32> to vector<1x16x16xf32>
      %cst_120 = arith.constant dense<0.000000e+00> : vector<1xf32>
      %259 = vector.multi_reduction <add>, %258, %cst_120 [1, 2] : vector<1x16x16xf32> to vector<1xf32>
      %260 = vector.shape_cast %259 : vector<1xf32> to vector<1x1x1xf32>
      %261 = vector.extract %260[0, 0, 0] : f32 from vector<1x1x1xf32>
      %262 = vector.broadcast %261 : f32 to vector<1x1xf32>
      %cst_121 = arith.constant 4.8828125E-4 : f32
      %263 = vector.broadcast %cst_121 : f32 to vector<1x1xf32>
      %264 = arith.mulf %262, %263 : vector<1x1xf32>
      %c0_122 = arith.constant 0 : index
      %c0_123 = arith.constant 0 : index
      %265 = vector.load %arg8[%c0_122, %c0_123] : memref<1x1xf32, #tpu.memory_space<vmem>>, vector<1x1xf32>
      %cst_124 = arith.constant 1.250000e-01 : f32
      %266 = vector.broadcast %cst_124 : f32 to vector<1x1xf32>
      %267 = arith.mulf %265, %266 : vector<1x1xf32>
      %268 = arith.addf %264, %267 : vector<1x1xf32>
      %c0_125 = arith.constant 0 : index
      %c0_126 = arith.constant 0 : index
      %c0_127 = arith.constant 0 : index
      %269 = vector.load %arg6[%c0_125, %c0_126, %c0_127] : memref<1x1x1xf32, #tpu.memory_space<vmem>>, vector<1x1x1xf32>
      %270 = vector.shape_cast %269 : vector<1x1x1xf32> to vector<1x1xf32>
      %271 = vector.shape_cast %268 : vector<1x1xf32> to vector<1x1x1xf32>
      tpu.vector_store %arg6[%c0_125, %c0_126, %c0_127], %271 {strides = array<i32>} : memref<1x1x1xf32, #tpu.memory_space<vmem>>, vector<1x1x1xf32>,
    } else {
    }
    return
  }
  func.func @transform_0(%arg0: i32, %arg1: i32) -> (i32, i32, i32) {
    %c1_i32 = arith.constant 1 : i32
    %0 = arith.muli %arg0, %c1_i32 : i32
    %1 = arith.addi %0, %arg1 : i32
    %c0_i32 = arith.constant 0 : i32
    %c0_i32_0 = arith.constant 0 : i32
    %c0_i32_1 = arith.constant 0 : i32
    return %1, %c0_i32, %c0_i32_0 : i32, i32, i32
  }
  func.func @transform_1(%arg0: i32, %arg1: i32) -> (i32, i32, i32) {
    %c1_i32 = arith.constant 1 : i32
    %0 = arith.muli %arg0, %c1_i32 : i32
    %1 = arith.addi %0, %arg1 : i32
    %c0_i32 = arith.constant 0 : i32
    %c0_i32_0 = arith.constant 0 : i32
    %c0_i32_1 = arith.constant 0 : i32
    return %1, %c0_i32, %c0_i32_0 : i32, i32, i32
  }
  func.func @transform_2(%arg0: i32, %arg1: i32) -> (i32, i32) {
    %c0_i32 = arith.constant 0 : i32
    %c0_i32_0 = arith.constant 0 : i32
    %c0_i32_1 = arith.constant 0 : i32
    return %c0_i32, %c0_i32_0 : i32, i32
  }
  func.func @transform_3(%arg0: i32, %arg1: i32) -> (i32, i32) {
    %c0_i32 = arith.constant 0 : i32
    %c0_i32_0 = arith.constant 0 : i32
    %c0_i32_1 = arith.constant 0 : i32
    return %c0_i32, %c0_i32_0 : i32, i32
  }
  func.func @transform_4(%arg0: i32, %arg1: i32) -> (i32, i32, i32) {
    %c0_i32 = arith.constant 0 : i32
    %c0_i32_0 = arith.constant 0 : i32
    %c0_i32_1 = arith.constant 0 : i32
    return %arg0, %c0_i32, %c0_i32_0 : i32, i32, i32
  }
}

</mosaic_0001>

<bundles_post_ra>
// kernel: tpu_custom_call.1
= control target key start
LH: loop header
LB: loop body
LE: loop exit
PB: predicated region body
PF: predicated region fallthrough
CT: control target
= control target key end

     0   :  { %s2023_s0 = inlined_call_operand.hbm [shape: f32[8,16,16], index: 0, kind: input, shape index: {}]   ;;  %s2024_s1 = inlined_call_operand.hbm [shape: f32[8,16,16], index: 1, kind: input, shape index: {}]   ;;  %s2025_s2 = inlined_call_operand.hbm [shape: bf16[16,16], index: 2, kind: input, shape index: {}]   ;;  %s2026_s3 = inlined_call_operand.hbm [shape: bf16[16,16], index: 3, kind: input, shape index: {}]   ;;  %s2027_s4 = inlined_call_operand.vmem [shape: f32[2,1,1], index: 4, kind: output, shape index: {}]  }
   0x1   :  { %2031 = sst [smem:[#allocation15_spill]] %s2023_s0 }
   0x2   :  { %2032 = sst [smem:[#allocation16_spill]] %s2025_s2 }
   0x3   :  { %9 = vsyncpa [#allocation5], 0 }
   0x4   :  { %11 = vsyncpa [#allocation5 + $0x1], 0 }
   0x5   :  { %12 = vsyncpa [#allocation7], 0 }
   0x6   :  { %14 = vsyncpa [#allocation7 + $0x1], 0 }
   0x7   :  { %15 = vsyncpa [#allocation10], 0  ;;  %s1586_s15 = smov 0   ;;  %s1588_s16 = smov 0  }
   0x8   :  { %s1590_s17 = smov 0   ;;  %s1592_s18 = smov 0  }
   0x9   :  { %s1594_s19 = smov 0   ;;  %s1596_s20 = smov 0  }
   0xa LB: > { %s2030_s21 = sadd.s32 4294967295, %s1549_s20   ;;  %p55_p0 = scmp.ne.s32.totalorder %s1533_s16, %s1529_s15  ;;  %s1549_s20 = sphi %s1596_s20, %s21_s20   ;;  %s1545_s19 = sphi %s1594_s19, %s2046_s19   ;;  %s1541_s18 = sphi %s1592_s18, %s2045_s18   ;;  %s1537_s17 = sphi %s1590_s17, %s2044_s17   ;;  %s1533_s16 = sphi %s1588_s16, %s2043_s16   ;;  %s1529_s15 = sphi %s1586_s15, %s2042_s15  }
   0xb   : > { %p1618_p1 = scmp.eq.s32.totalorder %s2030_s21, 0  ;;  %p1116_p2 = scmp.ge.s32.totalorder %s1549_s20, 1 }
   0xc   : > { %p162_p3 = scmp.lt.s32.totalorder %s1549_s20, 3  ;;  %s1551_s25 = smov [#allocation8]  }
   0xd   : > { %s2033_s22 = scalar_select %p1618_p1, 1, 0 }
   0xe   : > { %p1626_p4 = por %p1618_p1, %p55_p0  ;;  %p1630_p5 = pnand %p1116_p2, %p162_p3 }
   0xf   : > { %s174_s26 = sshll.u32 %s1551_s25, 4  ;;  %s1552_s28 = smov [#allocation9]   ;;  %s175_s26 = int_to_ptr.vmem [resolvable:$true] %s174_s26 }
  0x10   : > { %p1246_p6 = pneg %p1630_p5  ;;  %s187_s29 = sshll.u32 %s1552_s28, 4  ;;  %s188_s29 = int_to_ptr.vmem [resolvable:$true] %s187_s29 }
  0x11   : > { %s1390_s30 = scalar_lea.vmem %s175_s26, 128  ;;  %p1398_p12 = scmp.lt.s32.totalorder %s175_s26, %s175_s26 }
  0x12   : > { %p1638_p7 = pnand %p1246_p6, %p1618_p1  ;;  %p1391_p9 = scmp.ne.s32.totalorder %s175_s26, %s1390_s30 }
  0x13   : > { %p1399_p13 = scmp.lt.s32.totalorder %s1390_s30, %s1390_s30 }
  0x14   : > { %p1381_p8 = pneg %p1638_p7 }
  0x15   : > { %p1400_p0 = por %p1399_p13, %p1398_p12 }
  0x16   : > { %p1393_p10 = pnand %p1391_p9, %p1381_p8 }
  0x18   : > { %p1394_p11 = pneg %p1393_p10 }
  0x1a   : > { %p1401_p2 = pnand %p1400_p0, %p1394_p11 }
  0x1c   : > { %1404 = shalt.err (!%p1401_p2)
}
  0x1d   : > { %s1553_s5 = smov 64   ;;  %s1554_s6 = smov 4  }
  0x1e   : > { %s2037_s2 = sld [smem:[#allocation16_spill]]  ;;  %s1416_s9 = scalar_lea.vmem %s188_s29, 128 }
  0x1f   : > { %p1417_p3 = scmp.ne.s32.totalorder %s188_s29, %s1416_s9  ;;  %p1424_p10 = scmp.lt.s32.totalorder %s188_s29, %s188_s29 }
  0x20   : > { %p1425_p1 = scmp.lt.s32.totalorder %s1416_s9, %s1416_s9 }
  0x21   : > { %p1419_p6 = pnand %p1417_p3, %p1381_p8 }
  0x22   : > { %p1426_p12 = por %p1425_p1, %p1424_p10 }
  0x23   : > { %p1420_p9 = pneg %p1419_p6 }
  0x24   : > { %1249 = dma.hbm_to_vmem [thread:$0]  (!%p1638_p7), %s2037_s2, 128, %s175_s26, [#allocation7], %s1553_s5, %s1553_s5, %s1554_s6  }
  0x25   : > { %p1427_p11 = pnand %p1426_p12, %p1420_p9 }
  0x27   : > { %1430 = shalt.err (!%p1427_p11)
}
  0x28   : > { %1252 = dma.hbm_to_vmem [thread:$0]  (!%p1638_p7), %s2026_s3, 128, %s188_s29, [#allocation10], %s1553_s5, %s1553_s5, %s1554_s6  }
  0x29   : > { %s33_s12 = sadd.s32 1, %s1545_s19  ;;  %s42_s13 = sadd.s32 1, %s1537_s17 }
  0x2a   : > { %p35_p1 = scmp.ge.s32.totalorder %s33_s12, 2  ;;  %p49_p8 = scmp.ne.s32.totalorder %s1537_s17, %s1533_s16 }
  0x2b   : > { %p50_p13 = scmp.eq.s32.totalorder %s1549_s20, 0  ;;  %p1262_p0 = scmp.lt.s32.totalorder %s1549_s20, 2 }
  0x2c   : > { %s2048_s12 = smov (%p35_p1, %s33_s12), 0  ;;  %s201_s14 = sand.u32 1, %s1537_s17  }
  0x2d   : > { %p51_p2 = por %p50_p13, %p49_p8  ;;  %s39_s15 = ssub.s32 %s1545_s19, %s2048_s12 }
  0x2e   : > { %p40_p3 = scmp.eq.s32.totalorder %s39_s15, 0  ;;  %s1671_s25 = sshll.u32 %s201_s14, 6 }
  0x2f   : > { %s1166_s26 = sshll.u32 %s1545_s19, 10  ;;  %s2038_s0 = sld [smem:[#allocation15_spill]] }
  0x30   : > { %s1675_s27 = scalar_select %p40_p3, %s1537_s17, %s42_s13  }
  0x31   : > { %s205_s5 = scalar_lea.vmem [#allocation4], %s1671_s25  ;;  %p1685_p7 = pnand %p1262_p0, %p51_p2 }
  0x32   : > { %s214_s6 = sshll.u32 %s205_s5, 4  ;;  %s202_s8 = scalar_lea.sflag [#allocation5], %s201_s14  ;;  %s215_s6 = int_to_ptr.vmem [resolvable:$true] %s214_s6 }
  0x33   : > { %p1433_p6 = pneg %p1685_p7  ;;  %s1444_s9 = scalar_lea.vmem %s215_s6, 1024 }
  0x34   : > { %p1445_p9 = scmp.ne.s32.totalorder %s215_s6, %s1444_s9  ;;  %s1555_s10 = smov [#allocation4]  }
  0x35   : > { %s213_s30 = scalar_lea.hbm %s2038_s0, %s1166_s26  ;;  %s1449_s11 = sshll.u32 %s1555_s10, 4  ;;  %s1450_s11 = int_to_ptr.vmem [resolvable:$false] %s1449_s11 }
  0x36   : > { %p1447_p10 = pnand %p1445_p9, %p1433_p6  ;;  %s1451_s13 = scalar_lea.vmem %s1450_s11, 2048 }
  0x37   : > { %p1452_p11 = scmp.lt.s32.totalorder %s215_s6, %s1450_s11  ;;  %p1453_p1 = scmp.lt.s32.totalorder %s1451_s13, %s1444_s9 }
  0x38   : > { %p1448_p12 = pneg %p1447_p10 }
  0x39   : > { %p1454_p8 = por %p1453_p1, %p1452_p11 }
  0x3b   : > { %p1455_p13 = pnand %p1454_p8, %p1448_p12 }
  0x3d   : > { %1458 = shalt.err (!%p1455_p13)
}
  0x3e   : > { %s1556_s15 = smov 128   ;;  %s1557_s14 = smov 8  }
  0x3f   : > { %1256 = dma.hbm_to_vmem [thread:$0]  (!%p1685_p7), %s213_s30, 1024, %s215_s6, %s202_s8, %s1556_s15, %s1556_s15, %s1557_s14  }
  0x40   : > { %s236_s5 = scalar_lea.hbm %s2024_s1, %s1166_s26  ;;  %s228_s10 = scalar_lea.vmem [#allocation6], %s1671_s25 }
  0x41   : > { %s237_s11 = sshll.u32 %s228_s10, 4  ;;  %s224_s9 = sand.u32 1, %s1549_s20   ;;  %s238_s11 = int_to_ptr.vmem [resolvable:$true] %s237_s11 }
  0x42   : > { %s225_s13 = scalar_lea.sflag [#allocation7], %s224_s9  ;;  %s1472_s21 = scalar_lea.vmem %s238_s11, 1024 }
  0x43   : > { %p1473_p0 = scmp.ne.s32.totalorder %s238_s11, %s1472_s21  ;;  %s1558_s0 = smov [#allocation6]  }
  0x44   : > { %s1477_s2 = sshll.u32 %s1558_s0, 4  ;;  %s1478_s2 = int_to_ptr.vmem [resolvable:$false] %s1477_s2 }
  0x45   : > { %p1475_p2 = pnand %p1473_p0, %p1433_p6  ;;  %s1479_s30 = scalar_lea.vmem %s1478_s2, 2048 }
  0x46   : > { %p1480_p9 = scmp.lt.s32.totalorder %s238_s11, %s1478_s2  ;;  %p1481_p10 = scmp.lt.s32.totalorder %s1479_s30, %s1472_s21 }
  0x47   : > { %p1476_p3 = pneg %p1475_p2 }
  0x48   : > { %p1482_p12 = por %p1481_p10, %p1480_p9 }
  0x4a   : > { %p1483_p11 = pnand %p1482_p12, %p1476_p3 }
  0x4c   : > { %1486 = shalt.err (!%p1483_p11)
}
  0x4d   : > { %1259 = dma.hbm_to_vmem [thread:$0]  (!%p1685_p7), %s236_s5, 1024, %s238_s11, %s225_s13, %s1556_s15, %s1556_s15, %s1557_s14  }
  0x4e   : > { %249 = sbr.rel (%p1630_p5) target bundleno = 786 (0x312), region = 36  ;;  %s251_s25 = sand.u32 (!%p1630_p5), 1, %s1533_s16  }
  0x4f   : > { %s1129_s26 = sshll.u32 (!%p1630_p5), %s251_s25, 6  ;;  %s252_s6 = scalar_lea.sflag (!%p1630_p5), [#allocation5], %s251_s25 }
  0x50   : > { %s1711_s8 = scalar_lea.vmem (!%p1630_p5), [#allocation4], %s1129_s26 }
  0x53   : > { %1512 = dma.done.wait (%p1626_p4), %s252_s6, 1024  }
  0x54   : > { %1514 = vsyncadd (%p1626_p4), %s252_s6, 4294966272  ;;  %s2040_s0 = sadd.s32 4294967295, %s1549_s20   ;;  %s264_s7 = scalar_lea.vmem [#allocation6], %s1129_s26 }
  0x55   : > { %s260_s2 = sand.u32 1, %s2040_s0  }
  0x56   : > { %s261_s21 = scalar_lea.sflag [#allocation7], %s260_s2 }
  0x57   : > { %1516 = dma.done.wait (%p1626_p4), %s261_s21, 1024  }
  0x58   : > { %1518 = vsyncadd (%p1626_p4), %s261_s21, 4294966272  ;;  %p2041_p5 = scmp.ne.s32.totalorder %s2033_s22, 0 }
  0x5a   : > { %1520 = dma.done.wait (%p2041_p5), [#allocation7], 128  }
  0x5b   : > { %1522 = vsyncadd (%p2041_p5), [#allocation7], 4294967168 }
  0x5c   : > { %1524 = dma.done.wait (%p2041_p5), [#allocation10], 128  }
  0x5d   : > { %1526 = vsyncadd (%p2041_p5), [#allocation10], 4294967168  ;;  %v1321_v0 = vld [vmem:[#allocation9] sm:$0xff]   ;;  %vm312_vm0 = vcmask 130048   ;;  %v1731_v1 = vld [vmem:[%s264_s7] sm:$0xff]  ;;  %v1559_v13 = vmov 0.0  }
  0x5e   : > { %v1733_v2 = vld [vmem:[%s264_s7 + $0x8] sm:$0xff]  ;;  %v1735_v3 = vld [vmem:[%s264_s7 + $0x10] sm:$0xff]  ;;  %1182 = vmatprep.subr.bf16.mxu0 %v1321_v0  ;;  %v1739_v5 = vld [vmem:[%s264_s7 + $0x18] sm:$0xff]  ;;  %1192 = vmatprep.subr.bf16.mxu1 %v1559_v13  ;;  %313 = vst.msk [vmem:[#allocation2] sm:$0xff] %vm312_vm0, %v1559_v13  ;;  %vm1560_vm1 = vmmov 0   ;;  %vm315_vm10 = vcmask 0  }
  0x5f   : > { %v325_v4 = vpack.c.bf16 %v1733_v2, %v1731_v1  ;;  %v1741_v6 = vld [vmem:[%s264_s7 + $0x20] sm:$0xff]  ;;  %v1743_v7 = vld [vmem:[%s264_s7 + $0x28] sm:$0xff]  ;;  %1183 = vmatpush3.bf16.msra.mxu0 %v1321_v0  ;;  %v326_v8 = vpack.c.bf16 %v1739_v5, %v1735_v3  ;;  %v1752_v10 = vld [vmem:[%s264_s7 + $0x30] sm:$0xff]  ;;  %314 = vst.msk [vmem:[#allocation2 + $0x8] sm:$0xff] %vm312_vm0, %v1559_v13  ;;  %1194 = vmatprep.mubr.msk.bf16.mxu1 %vm1560_vm1, %v1559_v13  ;;  %p304_p4 = scmp.lt.s32.totalorder %s1541_s18, 1 }
  0x60   : > { %v327_v9 = vpack.c.bf16 %v1743_v7, %v1741_v6  ;;  %v1754_v11 = vld [vmem:[%s264_s7 + $0x38] sm:$0xff]  ;;  %1204 = vmatprep.subr.bf16.mxu0 %v1559_v13  ;;  %v1322_v20 = vld [vmem:[#allocation8] sm:$0xff]   ;;  %v1783_v28 = vld [vmem:[%s1711_s8 + $0x8] sm:$0xff]  ;;  %316 = vst.msk [vmem:[#allocation3] sm:$0x1] %vm315_vm10, %v1559_v13 }
  0x61   : > { %1184 = vmatprep.mubr.msk.bf16.mxu0 %vm312_vm0, %v325_v4  ;;  %v328_v12 = vpack.c.bf16 %v1754_v11, %v1752_v10  ;;  %v1780_v27 = vld [vmem:[%s1711_s8] sm:$0xff]  ;;  %v485_v30 = vand.u32 2147483647, %v1783_v28  ;;  %v1788_v35 = vld [vmem:[%s1711_s8 + $0x10] sm:$0xff]  ;;  %v1791_v36 = vld [vmem:[%s1711_s8 + $0x18] sm:$0xff]  ;;  %s2050_s18 = smov (!%p304_p4, %s1541_s18), 1 }
  0x62   : > { %1185 = vmatmul.mubr.msk.bf16.vlgmr.msra.gmra.mxu0 %vm312_vm0, %v326_v8  ;;  %v484_v29 = vand.u32 2147483647, %v1780_v27  ;;  %v623_v37 = vand.u32 2147483647, %v1788_v35  ;;  %v624_v38 = vand.u32 2147483647, %v1791_v36  ;;  %s306_s13 = scalar_lea.vmem %s2027_s4, %s2050_s18 }
  0x63   : > { %1188 = vmatprep.mubr.msk.bf16.mxu0 %vm312_vm0, %v327_v9  ;;  %v487_v32 = vsub.f32 0.0, %v485_v30  ;;  %v1801_v46 = vld [vmem:[%s1711_s8 + $0x20] sm:$0xff]  ;;  %v1804_v47 = vld [vmem:[%s1711_s8 + $0x28] sm:$0xff]  ;;  %v1821_v60 = vld [vmem:[%s1711_s8 + $0x30] sm:$0xff] }
  0x64   : > { %v486_v31 = vsub.f32 0.0, %v484_v29  ;;  %v625_v39 = vsub.f32 0.0, %v623_v37  ;;  %v626_v40 = vsub.f32 0.0, %v624_v38  ;;  %v761_v49 = vand.u32 2147483647, %v1801_v46  ;;  %v1824_v61 = vld [vmem:[%s1711_s8 + $0x38] sm:$0xff] }
  0x65   : > { %v490_v34 = vmul.f32 1.442695, %v487_v32  ;;  %v762_v51 = vand.u32 2147483647, %v1804_v47  ;;  %v899_v63 = vand.u32 2147483647, %v1821_v60 }
  0x66   : > { %v488_v33 = vmul.f32 1.442695, %v486_v31  ;;  %v627_v41 = vmul.f32 1.442695, %v625_v39  ;;  %v629_v42 = vmul.f32 1.442695, %v626_v40 }
  0x67   : > { %v763_v53 = vsub.f32 0.0, %v761_v49  ;;  %v764_v54 = vsub.f32 0.0, %v762_v51  ;;  %v900_v4 = vand.u32 2147483647, %v1824_v61  ;;  %v901_v9 = vsub.f32 0.0, %v899_v63  ;;  %v557_v49 = vld [vmem:[#allocation2 + $0x8] sm:$0xff] }
  0x68   : > { %1323 = vpow2.f32 %v488_v33 }
  0x69   : > { %1325 = vpow2.f32 %v490_v34  ;;  %v765_v55 = vmul.f32 1.442695, %v763_v53  ;;  %v767_v56 = vmul.f32 1.442695, %v764_v54 }
  0x6a   : > { %1189 = vmatmul.mubr.msk.bf16.gmra.mxu0 %vm312_vm0, %v328_v12  ;;  %1327 = vpow2.f32 %v627_v41  ;;  %v903_v12 = vmul.f32 1.442695, %v901_v9  ;;  %v556_v41 = vld [vmem:[#allocation2] sm:$0xff] }
  0x6b   : > { %1206 = vmatprep.mubr.msk.bf16.mxu0 %vm1560_vm1, %v1559_v13  ;;  %1329 = vpow2.f32 %v629_v42 }
  0x75   : > { %v1795_v43 = vpop.eup %1323 }
  0x76   : > { %v1797_v44 = vpop.eup %1325  ;;  %v492_v45 = vadd.f32 1.0, %v1795_v43 }
  0x77   : > { %v1807_v48 = vadd.f32 1.0, %v1797_v44  ;;  %v1813_v57 = vpop.eup %1327 }
  0x78   : > { %v1140_v50 = vadd.f32 -1.0, %v492_v45  ;;  %1331 = vlog2.f32 %v492_v45  ;;  %v1815_v58 = vpop.eup %1329  ;;  %v1818_v59 = vadd.f32 1.0, %v1813_v57  ;;  %vm494_vm2 = vcmp.eq.f32.partialorder %v492_v45, 1.0 }
  0x79   : > { %v1141_v52 = vadd.f32 -1.0, %v1807_v48  ;;  %1333 = vlog2.f32 %v1807_v48  ;;  %v1827_v62 = vadd.f32 1.0, %v1815_v58  ;;  %vm495_vm3 = vcmp.eq.f32.partialorder %v1807_v48, 1.0 }
  0x7a   : > { %1335 = vrcp.f32 %v1140_v50  ;;  %v1147_v0 = vadd.f32 -1.0, %v1818_v59  ;;  %vm633_vm4 = vcmp.eq.f32.partialorder %v1818_v59, 1.0 }
  0x7b   : > { %1337 = vrcp.f32 %v1141_v52  ;;  %v1148_v8 = vadd.f32 -1.0, %v1827_v62  ;;  %vm634_vm5 = vcmp.eq.f32.partialorder %v1827_v62, 1.0 }
  0x7c   : > { %1339 = vpow2.f32 %v765_v55 }
  0x7d   : > { %1341 = vpow2.f32 %v767_v56 }
  0x7e   : > { %1343 = vlog2.f32 %v1818_v59 }
  0x7f   : > { %1345 = vlog2.f32 %v1827_v62 }
  0x80   : > { %1347 = vrcp.f32 %v1147_v0 }
  0x81   : > { %1349 = vrcp.f32 %v1148_v8 }
  0x82   : > { %1351 = vpow2.f32 %v903_v12  ;;  %v1877_v12 = vmul.f32 %v1791_v36, %v1739_v5 }
 0x122   : > { %v1186_v14 = vpop.f32.mrf.mxu0 }
 0x124   : > { %v384_v15 = vpop.f32.mrf.mxu0 }
 0x126   : > { %v1187_v16 = vpop.f32.mrf.mxu0 }
 0x127   : > { %v416_v22 = vpack.c.bf16 %v1187_v16, %v1186_v14  ;;  %v1332_v14 = vpop.eup %1331  ;;  %v902_v16 = vsub.f32 0.0, %v900_v4  ;;  %v1872_v4 = vmul.f32 %v1788_v35, %v1735_v3 }
 0x128   : > { %v387_v17 = vpop.f32.mrf.mxu0 }
 0x129   : > { %v415_v18 = vpack.c.bf16 %v387_v17, %v384_v15  ;;  %v510_v15 = vmax.f32 %v1780_v27, 0.0  ;;  %v1334_v17 = vpop.eup %1333  ;;  %v905_v31 = vmul.f32 1.442695, %v902_v16 }
 0x12a   : > { %v1190_v19 = vpop.f32.mrf.mxu0 }
 0x12b   : > { %1193 = vmatpush3.bf16.msra.mxu1 %v415_v18  ;;  %v497_v18 = vmul.f32 0.6931472, %v1332_v14  ;;  %1353 = vpow2.f32 %v905_v31 }
 0x12c   : > { %v400_v21 = vpop.f32.mrf.mxu0  ;;  %1198 = vmatprep.subr.bf16.mxu1 %v1559_v13 }
 0x12e   : > { %v1191_v23 = vpop.f32.mrf.mxu0  ;;  %1195 = vmatmul.mubr.msk.bf16.vlgmr.msra.gmra.mxu1 %vm312_vm0, %v1322_v20 }
 0x12f   : > { %1199 = vmatpush3.bf16.msra.mxu1 %v416_v22  ;;  %1200 = vmatprep.mubr.msk.bf16.mxu1 %vm1560_vm1, %v1559_v13  ;;  %v418_v26 = vpack.c.bf16 %v1191_v23, %v1190_v19  ;;  %v511_v19 = vmax.f32 %v1783_v28, 0.0  ;;  %v1839_v22 = vmul.f32 %v1780_v27, %v1731_v1 }
 0x130   : > { %v403_v24 = vpop.f32.mrf.mxu0  ;;  %1210 = vmatprep.subr.bf16.mxu1 %v1559_v13 }
 0x131   : > { %v417_v25 = vpack.c.bf16 %v403_v24, %v400_v21  ;;  %v499_v21 = vmul.f32 0.6931472, %v1334_v17  ;;  %v514_v30 = vsub.f32 %v510_v15, %v1839_v22 }
 0x133   : > { %1205 = vmatpush3.bf16.msra.mxu0 %v417_v25  ;;  %v1844_v25 = vmul.f32 %v1783_v28, %v1733_v2 }
 0x135   : > { %v515_v34 = vsub.f32 %v511_v19, %v1844_v25 }
 0x136   : > { %1201 = vmatmul.mubr.msk.bf16.vlgmr.msra.gmra.mxu1 %vm312_vm0, %v1322_v20  ;;  %1207 = vmatmul.mubr.msk.bf16.vlgmr.msra.gmra.mxu0 %vm312_vm0, %v1322_v20 }
 0x137   : > { %1211 = vmatpush3.bf16.msra.mxu1 %v418_v26  ;;  %1212 = vmatprep.mubr.msk.bf16.mxu1 %vm1560_vm1, %v1559_v13 }
 0x13e   : > { %1213 = vmatmul.mubr.msk.bf16.vlgmr.msra.gmra.mxu1 %vm312_vm0, %v1322_v20  ;;  %v1336_v20 = vpop.eup %1335 }
 0x13f   : > { %v1338_v23 = vpop.eup %1337  ;;  %v503_v24 = vmul.f32 %v1336_v20, %v1795_v43 }
 0x140   : > { %v1846_v26 = vpop.eup %1339  ;;  %v505_v29 = vmul.f32 %v1338_v23, %v1797_v44 }
 0x141   : > { %v1850_v32 = vpop.eup %1341  ;;  %v506_v33 = vmul.f32 %v503_v24, %v497_v18  ;;  %v1855_v37 = vadd.f32 1.0, %v1846_v26 }
 0x142   : > { %v507_v38 = vmul.f32 %v505_v29, %v499_v21  ;;  %v1858_v39 = vadd.f32 1.0, %v1850_v32  ;;  %v1344_v53 = vpop.eup %1343 }
 0x143   : > { %v508_v40 = vsel %vm494_vm2, %v1795_v43, %v506_v33  ;;  %1355 = vlog2.f32 %v1855_v37  ;;  %v1154_v42 = vadd.f32 -1.0, %v1855_v37  ;;  %v649_v43 = vmax.f32 %v1788_v35, 0.0  ;;  %v1346_v55 = vpop.eup %1345 }
 0x144   : > { %v509_v45 = vsel %vm495_vm3, %v1797_v44, %v507_v38  ;;  %v516_v48 = vadd.f32 %v514_v30, %v508_v40  ;;  %1357 = vlog2.f32 %v1858_v39  ;;  %v1155_v51 = vadd.f32 -1.0, %v1858_v39  ;;  %v1348_v63 = vpop.eup %1347 }
 0x145   : > { %v517_v50 = vadd.f32 %v515_v34, %v509_v45  ;;  %1359 = vrcp.f32 %v1154_v42  ;;  %v636_v56 = vmul.f32 0.6931472, %v1344_v53  ;;  %v650_v44 = vmax.f32 %v1791_v36, 0.0  ;;  %v1350_v8 = vpop.eup %1349 }
 0x146   : > { %v558_v52 = vadd.f32 %v556_v41, %v516_v48  ;;  %1361 = vrcp.f32 %v1155_v51  ;;  %v638_v0 = vmul.f32 0.6931472, %v1346_v55  ;;  %v642_v9 = vmul.f32 %v1348_v63, %v1813_v57  ;;  %v1879_v14 = vpop.eup %1351 }
 0x147   : > { %v559_v54 = vadd.f32 %v557_v49, %v517_v50  ;;  %v644_v15 = vmul.f32 %v1350_v8, %v1815_v58  ;;  %v653_v16 = vsub.f32 %v649_v43, %v1872_v4  ;;  %v654_v18 = vsub.f32 %v650_v44, %v1877_v12  ;;  %v1892_v59 = vpop.eup %1353 }
 0x148   : > { %560 = vst.msk [vmem:[#allocation2] sm:$0xff] %vm312_vm0, %v558_v52  ;;  %v645_v17 = vmul.f32 %v642_v9, %v636_v56  ;;  %v1887_v19 = vadd.f32 1.0, %v1879_v14  ;;  %v787_v34 = vmax.f32 %v1801_v46, 0.0  ;;  %v908_v38 = vadd.f32 1.0, %v1892_v59 }
 0x149   : > { %561 = vst.msk [vmem:[#allocation2 + $0x8] sm:$0xff] %vm312_vm0, %v559_v54  ;;  %v646_v20 = vmul.f32 %v644_v15, %v638_v0  ;;  %v788_v48 = vmax.f32 %v1804_v47, 0.0  ;;  %vm771_vm6 = vcmp.eq.f32.partialorder %v1855_v37, 1.0  ;;  %v1908_v53 = vmul.f32 %v1804_v47, %v1743_v7 }
 0x14a   : > { %v647_v21 = vsel %vm633_vm4, %v1813_v57, %v645_v17  ;;  %1363 = vlog2.f32 %v1887_v19  ;;  %v1161_v23 = vadd.f32 -1.0, %v1887_v19  ;;  %v1162_v51 = vadd.f32 -1.0, %v908_v38 }
 0x14b   : > { %v648_v24 = vsel %vm634_vm5, %v1815_v58, %v646_v20  ;;  %v655_v29 = vadd.f32 %v653_v16, %v647_v21  ;;  %v1900_v58 = vmul.f32 %v1801_v46, %v1741_v6  ;;  %vm772_vm7 = vcmp.eq.f32.partialorder %v1858_v39, 1.0 }
 0x14c   : > { %v656_v31 = vadd.f32 %v654_v18, %v648_v24  ;;  %1365 = vrcp.f32 %v1161_v23  ;;  %v792_v56 = vsub.f32 %v788_v48, %v1908_v53  ;;  %v925_v18 = vmax.f32 %v1821_v60, 0.0 }
 0x14d   : > { %1367 = vlog2.f32 %v908_v38  ;;  %v791_v54 = vsub.f32 %v787_v34, %v1900_v58  ;;  %v1920_v39 = vmul.f32 %v1821_v60, %v1752_v10  ;;  %vm909_vm8 = vcmp.eq.f32.partialorder %v1887_v19, 1.0 }
 0x14e   : > { %1369 = vrcp.f32 %v1162_v51  ;;  %v1930_v34 = vmul.f32 %v1824_v61, %v1754_v11  ;;  %vm910_vm9 = vcmp.eq.f32.partialorder %v908_v38, 1.0 }
 0x14f   : > { %v695_v30 = vld [vmem:[#allocation2] sm:$0xff]  ;;  %v929_v24 = vsub.f32 %v925_v18, %v1920_v39 }
 0x150   : > { %v1356_v62 = vpop.eup %1355  ;;  %v696_v33 = vld [vmem:[#allocation2 + $0x8] sm:$0xff]  ;;  %v697_v57 = vadd.f32 %v695_v30, %v655_v29  ;;  %v926_v30 = vmax.f32 %v1824_v61, 0.0 }
 0x151   : > { %v1358_v40 = vpop.eup %1357  ;;  %v774_v41 = vmul.f32 0.6931472, %v1356_v62  ;;  %v698_v45 = vadd.f32 %v696_v33, %v656_v31 }
 0x152   : > { %v1360_v42 = vpop.eup %1359  ;;  %699 = vst.msk [vmem:[#allocation2] sm:$0xff] %vm312_vm0, %v697_v57  ;;  %v776_v49 = vmul.f32 0.6931472, %v1358_v40 }
 0x153   : > { %v780_v50 = vmul.f32 %v1360_v42, %v1846_v26  ;;  %v1362_v52 = vpop.eup %1361  ;;  %700 = vst.msk [vmem:[#allocation2 + $0x8] sm:$0xff] %vm312_vm0, %v698_v45 }
 0x154   : > { %v782_v43 = vmul.f32 %v1362_v52, %v1850_v32 }
 0x155   : > { %v783_v55 = vmul.f32 %v780_v50, %v774_v41  ;;  %v930_v41 = vsub.f32 %v926_v30, %v1930_v34 }
 0x156   : > { %v784_v44 = vmul.f32 %v782_v43, %v776_v49 }
 0x157   : > { %v785_v63 = vsel %vm771_vm6, %v1846_v26, %v783_v55  ;;  %v1364_v15 = vpop.eup %1363 }
 0x158   : > { %v793_v0 = vadd.f32 %v791_v54, %v785_v63  ;;  %v786_v37 = vsel %vm772_vm7, %v1850_v32, %v784_v44  ;;  %v912_v21 = vmul.f32 0.6931472, %v1364_v15 }
 0x159   : > { %v794_v8 = vadd.f32 %v792_v56, %v786_v37  ;;  %v833_v9 = vld [vmem:[#allocation2] sm:$0xff]  ;;  %v1366_v23 = vpop.eup %1365 }
 0x15a   : > { %v834_v16 = vld [vmem:[#allocation2 + $0x8] sm:$0xff]  ;;  %v835_v17 = vadd.f32 %v833_v9, %v793_v0  ;;  %v918_v26 = vmul.f32 %v1366_v23, %v1879_v14  ;;  %v1368_v32 = vpop.eup %1367 }
 0x15b   : > { %v836_v20 = vadd.f32 %v834_v16, %v794_v8  ;;  %v914_v62 = vmul.f32 0.6931472, %v1368_v32  ;;  %v1370_v31 = vpop.eup %1369  ;;  %v533_v8 = vadd.f32 %v1780_v27, %v1731_v1 }
 0x15c   : > { %837 = vst.msk [vmem:[#allocation2] sm:$0xff] %vm312_vm0, %v835_v17  ;;  %v921_v29 = vmul.f32 %v918_v26, %v912_v21  ;;  %v920_v40 = vmul.f32 %v1370_v31, %v1892_v59  ;;  %v534_v26 = vadd.f32 %v1783_v28, %v1733_v2  ;;  %v810_v28 = vadd.f32 %v1801_v46, %v1741_v6 }
 0x15d   : > { %838 = vst.msk [vmem:[#allocation2 + $0x8] sm:$0xff] %vm312_vm0, %v836_v20 }
 0x15e   : > { %v923_v33 = vsel %vm909_vm8, %v1879_v14, %v921_v29  ;;  %v922_v42 = vmul.f32 %v920_v40, %v914_v62  ;;  %v673_v40 = vadd.f32 %v1791_v36, %v1739_v5 }
 0x15f   : > { %v931_v57 = vadd.f32 %v929_v24, %v923_v33 }
 0x160   : > { %v924_v48 = vsel %vm910_vm9, %v1892_v59, %v922_v42 }
 0x161   : > { %v932_v50 = vadd.f32 %v930_v41, %v924_v48 }
 0x163   : > { %v971_v19 = vld [vmem:[#allocation2] sm:$0xff] }
 0x164   : > { %v973_v45 = vadd.f32 %v971_v19, %v931_v57  ;;  %v972_v49 = vld [vmem:[#allocation2 + $0x8] sm:$0xff] }
 0x165   : > { %v974_v14 = vadd.f32 %v972_v49, %v932_v50 }
 0x166   : > { %975 = vst.msk [vmem:[#allocation2] sm:$0xff] %vm312_vm0, %v973_v45 }
 0x167   : > { %976 = vst.msk [vmem:[#allocation2 + $0x8] sm:$0xff] %vm312_vm0, %v974_v14 }
 0x1ee   : > { %v467_v51 = vpop.f32.mrf.mxu1 }
 0x1ef   : > { %v474_v52 = vmul.f32 0.0010405828, %v467_v51 }
 0x1f0   : > { %v1196_v54 = vpop.f32.mrf.mxu1 }
 0x1f1   : > { %v476_v43 = vsub.f32 %v474_v52, %v1731_v1  ;;  %v672_v1 = vadd.f32 %v1788_v35, %v1735_v3 }
 0x1f2   : > { %v470_v38 = vpop.f32.mrf.mxu1 }
 0x1f3   : > { %v478_v55 = vand.u32 2147483647, %v476_v43  ;;  %v475_v56 = vmul.f32 0.0010405828, %v470_v38 }
 0x1f4   : > { %v1197_v44 = vpop.f32.mrf.mxu1 }
 0x1f5   : > { %v480_v63 = vmul.f32 5.0, %v478_v55  ;;  %v477_v0 = vsub.f32 %v475_v56, %v1733_v2 }
 0x1f6   : > { %v606_v59 = vpop.f32.mrf.mxu1  ;;  %v744_v37 = vpop.f32.mrf.mxu0 }
 0x1f7   : > { %v482_v9 = vadd.f32 1.0, %v480_v63  ;;  %v479_v15 = vand.u32 2147483647, %v477_v0  ;;  %v613_v16 = vmul.f32 0.0010405828, %v606_v59 }
 0x1f8   : > { %v1202_v17 = vpop.f32.mrf.mxu1  ;;  %v751_v18 = vmul.f32 0.0010405828, %v744_v37  ;;  %v1208_v20 = vpop.f32.mrf.mxu0 }
 0x1f9   : > { %v481_v21 = vmul.f32 5.0, %v479_v15  ;;  %v615_v23 = vsub.f32 %v613_v16, %v1735_v3  ;;  %v518_v30 = vmul.f32 %v1839_v22, %v482_v9  ;;  %v535_v62 = vmul.f32 %v533_v8, %v482_v9 }
 0x1fa   : > { %v609_v32 = vpop.f32.mrf.mxu1  ;;  %v753_v24 = vsub.f32 %v751_v18, %v1741_v6  ;;  %v747_v29 = vpop.f32.mrf.mxu0  ;;  %v811_v22 = vadd.f32 %v1804_v47, %v1743_v7  ;;  %v948_v16 = vadd.f32 %v1821_v60, %v1752_v10 }
 0x1fb   : > { %v483_v27 = vadd.f32 1.0, %v481_v21  ;;  %v617_v31 = vand.u32 2147483647, %v615_v23  ;;  %v614_v33 = vmul.f32 0.0010405828, %v609_v32  ;;  %v520_v36 = vsel %vm312_vm0, %v518_v30, 0.0 }
 0x1fc   : > { %v1203_v57 = vpop.f32.mrf.mxu1  ;;  %v755_v41 = vand.u32 2147483647, %v753_v24  ;;  %v752_v19 = vmul.f32 0.0010405828, %v747_v29  ;;  %v1209_v2 = vpop.f32.mrf.mxu0  ;;  %v537_v14 = vsel %vm312_vm0, %v535_v62, 0.0 }
 0x1fd   : > { %v619_v42 = vmul.f32 5.0, %v617_v31  ;;  %v616_v45 = vsub.f32 %v614_v33, %v1739_v5  ;;  %v519_v3 = vmul.f32 %v1844_v25, %v483_v27  ;;  %v536_v35 = vmul.f32 %v534_v26, %v483_v27  ;;  %v983_v2 = vld [vmem:[#allocation2] sm:$0xff] }
 0x1fe   : > { %v757_v48 = vmul.f32 5.0, %v755_v41  ;;  %v754_v49 = vsub.f32 %v752_v19, %v1743_v7  ;;  %v882_v50 = vpop.f32.mrf.mxu1 }
 0x1ff   : > { %v621_v51 = vadd.f32 1.0, %v619_v42  ;;  %v618_v52 = vand.u32 2147483647, %v616_v45  ;;  %v521_v6 = vsel %vm312_vm0, %v519_v3, 0.0  ;;  %v889_v46 = vmul.f32 0.0010405828, %v882_v50 }
 0x200   : > { %v759_v47 = vadd.f32 1.0, %v757_v48  ;;  %v756_v54 = vand.u32 2147483647, %v754_v49  ;;  %v522_v43 = vadd.f32 %v521_v6, %v520_v36  ;;  %v1214_v5 = vpop.f32.mrf.mxu1  ;;  %v538_v25 = vsel %vm312_vm0, %v536_v35, 0.0 }
 0x201   : > { %v620_v38 = vmul.f32 5.0, %v618_v52  ;;  %v891_v55 = vsub.f32 %v889_v46, %v1752_v10  ;;  %v539_v7 = vadd.f32 %v538_v25, %v537_v14  ;;  %v657_v56 = vmul.f32 %v1872_v4, %v621_v51 }
 0x202   : > { %v758_v44 = vmul.f32 5.0, %v756_v54  ;;  %523 = vadd.xlane.f32.xlu0 %v522_v43  ;;  %v885_v63 = vpop.f32.mrf.mxu1  ;;  %v674_v0 = vmul.f32 %v672_v1, %v621_v51  ;;  %v795_v59 = vmul.f32 %v1900_v58, %v759_v47  ;;  %v812_v37 = vmul.f32 %v810_v28, %v759_v47  ;;  %v984_v28 = vld [vmem:[#allocation2 + $0x8] sm:$0xff] }
 0x203   : > { %v622_v8 = vadd.f32 1.0, %v620_v38  ;;  %v893_v9 = vand.u32 2147483647, %v891_v55  ;;  %v890_v15 = vmul.f32 0.0010405828, %v885_v63  ;;  %v659_v18 = vsel %vm312_vm0, %v657_v56, 0.0 }
 0x204   : > { %v760_v17 = vadd.f32 1.0, %v758_v44  ;;  %v676_v20 = vsel %vm312_vm0, %v674_v0, 0.0  ;;  %v1215_v21 = vpop.f32.mrf.mxu1  ;;  %v949_v4 = vadd.f32 %v1824_v61, %v1754_v11  ;;  %v797_v10 = vsel %vm312_vm0, %v795_v59, 0.0 }
 0x205   : > { %v895_v23 = vmul.f32 5.0, %v893_v9  ;;  %v892_v26 = vsub.f32 %v890_v15, %v1754_v11  ;;  %v658_v58 = vmul.f32 %v1877_v12, %v622_v8  ;;  %v675_v32 = vmul.f32 %v673_v40, %v622_v8 }
 0x206   : > { %540 = vadd.xlane.f32.xlu0 %v539_v7  ;;  %v796_v24 = vmul.f32 %v1908_v53, %v760_v17  ;;  %v813_v60 = vmul.f32 %v811_v22, %v760_v17  ;;  %v814_v29 = vsel %vm312_vm0, %v812_v37, 0.0  ;;  %v985_v49 = vsel %vm312_vm0, %v983_v2, 0.0 }
 0x207   : > { %v897_v30 = vadd.f32 1.0, %v895_v23  ;;  %v894_v62 = vand.u32 2147483647, %v892_v26  ;;  %v660_v1 = vsel %vm312_vm0, %v658_v58, 0.0  ;;  %v677_v61 = vsel %vm312_vm0, %v675_v32, 0.0 }
 0x208   : > { %v661_v27 = vadd.f32 %v660_v1, %v659_v18  ;;  %v678_v31 = vadd.f32 %v677_v61, %v676_v20  ;;  %v798_v11 = vsel %vm312_vm0, %v796_v24, 0.0  ;;  %v815_v12 = vsel %vm312_vm0, %v813_v60, 0.0 }
 0x209   : > { %v896_v33 = vmul.f32 5.0, %v894_v62  ;;  %v799_v40 = vadd.f32 %v798_v11, %v797_v10  ;;  %v816_v53 = vadd.f32 %v815_v12, %v814_v29  ;;  %v950_v57 = vmul.f32 %v948_v16, %v897_v30 }
 0x20a   : > { %662 = vadd.xlane.f32.xlu1 %v661_v27  ;;  %v933_v41 = vmul.f32 %v1920_v39, %v897_v30  ;;  %v986_v39 = vsel %vm312_vm0, %v984_v28, 0.0 }
 0x20b   : > { %v898_v19 = vadd.f32 1.0, %v896_v33  ;;  %800 = vadd.xlane.f32.xlu0 %v799_v40  ;;  %v952_v42 = vsel %vm312_vm0, %v950_v57, 0.0  ;;  %v987_v14 = vadd.f32 %v986_v39, %v985_v49 }
 0x20c   : > { %v935_v3 = vsel %vm312_vm0, %v933_v41, 0.0 }
 0x20d   : > { %v951_v22 = vmul.f32 %v949_v4, %v898_v19  ;;  %v934_v45 = vmul.f32 %v1930_v34, %v898_v19 }
 0x20e   : > { %679 = vadd.xlane.f32.xlu1 %v678_v31 }
 0x20f   : > { %v953_v35 = vsel %vm312_vm0, %v951_v22, 0.0  ;;  %v936_v48 = vsel %vm312_vm0, %v934_v45, 0.0 }
 0x210   : > { %v954_v36 = vadd.f32 %v953_v35, %v952_v42  ;;  %v937_v50 = vadd.f32 %v936_v48, %v935_v3 }
 0x212   : > { %817 = vadd.xlane.f32.xlu1 %v816_v53  ;;  %938 = vadd.xlane.f32.xlu0 %v937_v50 }
 0x216   : > { %955 = vadd.xlane.f32.xlu1 %v954_v36  ;;  %988 = vadd.xlane.f32.xlu0 %v987_v14 }
 0x28b   : > { %v524_v34 = vpop.xlane.xlu0 %523 }
 0x28c   : > { %v525_v51 = vrot.slane %v524_v34, 4 }
 0x28e   : > { %v526_v52 = vadd.f32 %v525_v51, %v524_v34 }
 0x28f   : > { %v541_v6 = vpop.xlane.xlu0 %540 }
 0x290   : > { %v527_v46 = vrot.slane %v526_v52, 2  ;;  %v542_v47 = vrot.slane %v541_v6, 4 }
 0x292   : > { %v543_v54 = vadd.f32 %v542_v47, %v541_v6  ;;  %v528_v43 = vadd.f32 %v527_v46, %v526_v52 }
 0x293   : > { %v663_v5 = vpop.xlane.xlu1 %662 }
 0x294   : > { %v544_v25 = vrot.slane %v543_v54, 2  ;;  %v664_v38 = vrot.slane %v663_v5, 4  ;;  %v529_v55 = vrot.slane %v528_v43, 1  ;;  %v801_v7 = vpop.xlane.xlu0 %800 }
 0x295   : > { %v802_v56 = vrot.slane %v801_v7, 4 }
 0x296   : > { %v665_v44 = vadd.f32 %v664_v38, %v663_v5  ;;  %v530_v63 = vadd.f32 %v529_v55, %v528_v43  ;;  %v545_v0 = vadd.f32 %v544_v25, %v543_v54 }
 0x297   : > { %v680_v59 = vpop.xlane.xlu1 %679  ;;  %v803_v37 = vadd.f32 %v802_v56, %v801_v7 }
 0x298   : > { %v666_v13 = vrot.slane %v665_v44, 2  ;;  %v681_v8 = vrot.slane %v680_v59, 4  ;;  %1216 = vpush %v530_v63  ;;  %v546_v9 = vrot.slane %v545_v0, 1 }
 0x299   : > { %v804_v15 = vrot.slane %v803_v37, 2 }
 0x29a   : > { %v682_v16 = vadd.f32 %v681_v8, %v680_v59  ;;  %v547_v17 = vadd.f32 %v546_v9, %v545_v0  ;;  %v667_v18 = vadd.f32 %v666_v13, %v665_v44  ;;  %v562_v44 = vld [vmem:[#allocation3] sm:$0x1] }
 0x29b   : > { %v818_v20 = vpop.xlane.xlu1 %817  ;;  %v939_v21 = vpop.xlane.xlu0 %938  ;;  %v805_v4 = vadd.f32 %v804_v15, %v803_v37 }
 0x29c   : > { %v683_v23 = vrot.slane %v682_v16, 2  ;;  %v819_v26 = vrot.slane %v818_v20, 4  ;;  %1218 = vpush %v547_v17  ;;  %v940_v58 = vrot.slane %v939_v21, 4  ;;  %v668_v32 = vrot.slane %v667_v18, 1 }
 0x29d   : > { %v806_v24 = vrot.slane %v805_v4, 1 }
 0x29e   : > { %v820_v10 = vadd.f32 %v819_v26, %v818_v20  ;;  %v941_v60 = vadd.f32 %v940_v58, %v939_v21  ;;  %v669_v29 = vadd.f32 %v668_v32, %v667_v18  ;;  %v684_v30 = vadd.f32 %v683_v23, %v682_v16 }
 0x29f   : > { %v956_v62 = vpop.xlane.xlu1 %955  ;;  %v989_v1 = vpop.xlane.xlu0 %988  ;;  %v807_v12 = vadd.f32 %v806_v24, %v805_v4 }
 0x2a0   : > { %v821_v61 = vrot.slane %v820_v10, 2  ;;  %v957_v27 = vrot.slane %v956_v62, 4  ;;  %v942_v31 = vrot.slane %v941_v60, 2  ;;  %1220 = vpush %v669_v29  ;;  %v685_v11 = vrot.slane %v684_v30, 1 }
 0x2a1   : > { %v990_v33 = vrot.slane %v989_v1, 4 }
 0x2a2   : > { %v958_v40 = vadd.f32 %v957_v27, %v956_v62  ;;  %v686_v53 = vadd.f32 %v685_v11, %v684_v30  ;;  %v822_v57 = vadd.f32 %v821_v61, %v820_v10  ;;  %v943_v41 = vadd.f32 %v942_v31, %v941_v60 }
 0x2a3   : > { %v991_v19 = vadd.f32 %v990_v33, %v989_v1 }
 0x2a4   : > { %v959_v2 = vrot.slane %v958_v40, 2  ;;  %1222 = vpush %v686_v53  ;;  %v823_v28 = vrot.slane %v822_v57, 1  ;;  %v944_v22 = vrot.slane %v943_v41, 1 }
 0x2a5   : > { %1224 = vpush %v807_v12  ;;  %v992_v42 = vrot.slane %v991_v19, 2 }
 0x2a6   : > { %v960_v45 = vadd.f32 %v959_v2, %v958_v40  ;;  %v824_v3 = vadd.f32 %v823_v28, %v822_v57  ;;  %v945_v35 = vadd.f32 %v944_v22, %v943_v41 }
 0x2a7   : > { %v993_v48 = vadd.f32 %v992_v42, %v991_v19 }
 0x2a8   : > { %1226 = vpush %v824_v3  ;;  %v961_v49 = vrot.slane %v960_v45, 1 }
 0x2a9   : > { %1228 = vpush %v945_v35  ;;  %v994_v39 = vrot.slane %v993_v48, 1 }
 0x2aa   : > { %v962_v36 = vadd.f32 %v961_v49, %v960_v45 }
 0x2ab   : > { %v995_v50 = vadd.f32 %v994_v39, %v993_v48 }
 0x2ac   : > { %1230 = vpush %v962_v36 }
 0x2ad   : > { %1232 = vpush %v995_v50 }
 0x2c9   : > { %s1217_s22 = spop %1216 }
 0x2ca   : > { %v532_v14 = vstv %s1217_s22 }
 0x2cb   : > { %v550_v38 = vadd.f32 1.0, %v532_v14 }
 0x2cd   : > { %s1219_s23 = spop %1218 }
 0x2ce   : > { %v549_v34 = vstv %s1219_s23 }
 0x2cf   : > { %v551_v51 = vsub.f32 %v549_v34, %v532_v14 }
 0x2d1   : > { %v552_v52 = vadd.f32 1.0, %v551_v51  ;;  %s1221_s24 = spop %1220 }
 0x2d2   : > { %v671_v6 = vstv %s1221_s24 }
 0x2d3   : > { %1371 = vrcp.f32 %v552_v52  ;;  %v689_v8 = vadd.f32 1.0, %v671_v6 }
 0x2d5   : > { %s1223_s15 = spop %1222 }
 0x2d6   : > { %v688_v46 = vstv %s1223_s15  ;;  %s1989_s14 = spop %1224 }
 0x2d7   : > { %v690_v47 = vsub.f32 %v688_v46, %v671_v6  ;;  %v809_v43 = vstv %s1989_s14 }
 0x2d8   : > { %v827_v4 = vadd.f32 1.0, %v809_v43 }
 0x2d9   : > { %v691_v54 = vadd.f32 1.0, %v690_v47  ;;  %s1227_s28 = spop %1226 }
 0x2da   : > { %v826_v5 = vstv %s1227_s28  ;;  %s1992_s29 = spop %1228 }
 0x2db   : > { %1373 = vrcp.f32 %v691_v54  ;;  %v828_v25 = vsub.f32 %v826_v5, %v809_v43  ;;  %v947_v63 = vstv %s1992_s29 }
 0x2dc   : > { %v965_v10 = vadd.f32 1.0, %v947_v63 }
 0x2dd   : > { %v829_v55 = vadd.f32 1.0, %v828_v25  ;;  %s1231_s5 = spop %1230 }
 0x2de   : > { %v964_v0 = vstv %s1231_s5  ;;  %s1233_s10 = spop %1232 }
 0x2df   : > { %1375 = vrcp.f32 %v829_v55  ;;  %v966_v13 = vsub.f32 %v964_v0, %v947_v63  ;;  %v997_v1 = vstv %s1233_s10 }
 0x2e0   : > { %v1372_v7 = vpop.eup %1371  ;;  %v998_v27 = vmul.f32 0.00048828125, %v997_v1 }
 0x2e1   : > { %v554_v56 = vmul.f32 %v1372_v7, %v550_v38  ;;  %v967_v16 = vadd.f32 1.0, %v966_v13 }
 0x2e3   : > { %v555_v59 = vsub.f32 1.0, %v554_v56  ;;  %1377 = vrcp.f32 %v967_v16 }
 0x2e5   : > { %v563_v37 = vadd.f32 %v562_v44, %v555_v59 }
 0x2e7   : > { %565 = vst.msk [vmem:[#allocation3] sm:$0x1] %vm315_vm10, %v563_v37 }
 0x2e8   : > { %v1374_v9 = vpop.eup %1373 }
 0x2e9   : > { %v693_v15 = vmul.f32 %v1374_v9, %v689_v8 }
 0x2eb   : > { %v694_v17 = vsub.f32 1.0, %v693_v15 }
 0x2ec   : > { %v1376_v21 = vpop.eup %1375 }
 0x2ed   : > { %v831_v23 = vmul.f32 %v1376_v21, %v827_v4 }
 0x2ee   : > { %v701_v18 = vld [vmem:[#allocation3] sm:$0x1] }
 0x2ef   : > { %v702_v20 = vadd.f32 %v701_v18, %v694_v17  ;;  %v832_v26 = vsub.f32 1.0, %v831_v23 }
 0x2f0   : > { %v1378_v24 = vpop.eup %1377 }
 0x2f1   : > { %703 = vst.msk [vmem:[#allocation3] sm:$0x1] %vm315_vm10, %v702_v20  ;;  %v969_v60 = vmul.f32 %v1378_v24, %v965_v10 }
 0x2f3   : > { %v970_v29 = vsub.f32 1.0, %v969_v60 }
 0x2f8   : > { %v839_v58 = vld [vmem:[#allocation3] sm:$0x1] }
 0x2f9   : > { %v840_v32 = vadd.f32 %v839_v58, %v832_v26 }
 0x2fb   : > { %841 = vst.msk [vmem:[#allocation3] sm:$0x1] %vm315_vm10, %v840_v32 }
 0x302   : > { %v977_v30 = vld [vmem:[#allocation3] sm:$0x1] }
 0x303   : > { %v978_v62 = vadd.f32 %v977_v30, %v970_v29 }
 0x305   : > { %979 = vst.msk [vmem:[#allocation3] sm:$0x1] %vm315_vm10, %v978_v62 }
 0x30c   : > { %v999_v61 = vld [vmem:[#allocation3] sm:$0x1] }
 0x30d   : > { %v1000_v31 = vmul.f32 0.125, %v999_v61 }
 0x30f   : > { %v1001_v11 = vadd.f32 %v1000_v31, %v998_v27 }
 0x311   : > { %1002 = vst.msk [vmem:[%s306_s13] sm:$0x1] %vm315_vm10, %v1001_v11 }
 0x312 PF: > { %s21_s20 = sadd.s32 1, %s1549_s20   ;;  %s2042_s15 = smov %s1533_s16 }
 0x313   : > { %p18_p7 = scmp.ge.s32.totalorder %s21_s20, 4   ;;  %s2043_s16 = smov %s1537_s17 }
 0x314   : > { %s2044_s17 = smov %s1675_s27  ;;  %s2045_s18 = smov %s1545_s19 }
 0x315   : > { %s2046_s19 = smov %s2048_s12  ;;  %20 = sbr.rel (!%p18_p7) target bundleno = 10 (0xa), region = 111 }
 0x31a   :  { %1020 = vsyncpa [#allocation5], 1 }
 0x31b   :  { %1022 = vsyncpa [#allocation5 + $0x1], 1 }
 0x31c   :  { %1023 = vsyncpa [#allocation7], 1 }
 0x31d   :  { %1025 = vsyncpa [#allocation7 + $0x1], 1 }
 0x31e   :  { %1026 = vsyncpa [#allocation10], 1 }

</bundles_post_ra>
